<compile_context>
chip_gen: v6e
topology: v6e:2x2x1
jax: 0.10.0
libtpu: 0.0.40
codegen_flags: <defaults>
</compile_context>

<pallas_src>
import functools

import jax
import jax.numpy as jnp
from jax.experimental import pallas as pl
from jax.experimental.pallas import tpu as pltpu


# ------------------------------ fused kernel --------------------------------

def _fused_block_kernel(*args, stride, has_expand, use_res):
    """One InvertedResidual block for one image; hidden activation stays in VMEM."""
    if has_expand:
        (x_ref, we_ref, be_ref, wd_ref, bd_ref,
         wp_ref, bp_ref, o_ref, hid_ref) = args
    else:
        x_ref, wd_ref, bd_ref, wp_ref, bp_ref, o_ref, hid_ref = args

    _, xh, xw, cin = x_ref.shape
    _, oh, ow, cout = o_ref.shape
    hidden = hid_ref.shape[-1]

    x = x_ref[0]                                        # (xh, xw, cin), f32

    # ---- 1x1 expand conv + folded BN + ReLU6 (bf16 MXU matmul, f32 accum) ----
    if has_expand:
        acc = jnp.dot(x.reshape(xh * xw, cin).astype(jnp.bfloat16),
                      we_ref[...], preferred_element_type=jnp.float32)
        hid = jnp.clip(acc + be_ref[...], 0.0, 6.0).reshape(xh, xw, hidden)
    else:
        hid = x

    # ---- stage the zero-padded hidden plane in VMEM scratch (never to HBM) ----
    # Zero only the 1-pixel border strips, not the whole plane; the interior is
    # fully overwritten below.  Re-zeroed each step (cheap) so the kernel stays
    # correct when the parallel batch axis is sharded across TensorCores.
    sdt = hid_ref.dtype
    zrow = jnp.zeros((1, xw + 2, hidden), sdt)
    hid_ref[pl.ds(0, 1), :, :] = zrow                    # top border row
    hid_ref[pl.ds(xh + 1, 1), :, :] = zrow               # bottom border row
    zcol = jnp.zeros((xh, 1, hidden), sdt)
    hid_ref[pl.ds(1, xh), pl.ds(0, 1), :] = zcol          # left border column
    hid_ref[pl.ds(1, xh), pl.ds(xw + 1, 1), :] = zcol     # right border column
    hid_ref[pl.ds(1, xh), pl.ds(1, xw), :] = hid.astype(sdt)

    # ---- 3x3 depthwise conv + folded BN + ReLU6 (VPU, f32) ----
    # Each tap is read straight from the scratch ref (no padded-plane value and
    # no value-slice copies).  Stride-2 row decimation rides on the tap read
    # (strided pl.ds on the cheap major axis); column decimation is applied once
    # after the 9-tap accumulation.  acc is initialized from the first tap.
    wdw = wd_ref[...]                                     # (3, 3, hidden), f32
    wc = (ow - 1) * stride + 1                            # contiguous column span

    def tap(dy, dx):
        rows = pl.ds(dy, oh, stride) if stride > 1 else pl.ds(dy, oh)
        t = hid_ref[rows, pl.ds(dx, wc), :]               # (oh, wc, hidden)
        return t.astype(jnp.float32) * wdw[dy, dx]

    acc = tap(0, 0)
    for dy in range(3):                                   # fully unrolled 3x3 taps
        for dx in range(3):
            if dy == 0 and dx == 0:
                continue
            acc = acc + tap(dy, dx)
    if stride > 1:
        acc = jax.lax.slice(acc, (0, 0, 0), (oh, wc, hidden), (1, stride, 1))
    dwo = jnp.clip(acc + bd_ref[...], 0.0, 6.0)           # (oh, ow, hidden)

    # ---- 1x1 projection + folded BN (+ residual), no activation ----
    out = jnp.dot(dwo.reshape(oh * ow, hidden).astype(jnp.bfloat16),
                  wp_ref[...], preferred_element_type=jnp.float32)
    out = out + bp_ref[...]
    if use_res:
        out = out + x.reshape(xh * xw, cin)               # f32 residual add
    o_ref[...] = out.reshape(1, oh, ow, cout).astype(o_ref.dtype)


# ----------------------------- Pallas wrapper --------------------------------

def _vmem_limit_bytes(need_bytes):
    """Per-generation VMEM budget: actual tile need, capped below physical VMEM."""
    try:
        phys = int(pltpu.get_tpu_info().vmem_capacity_bytes)
    except Exception:
        phys = 64 * 1024 * 1024            # assume the smallest (v7x per-core) size
    cap = int(phys * 0.85)                 # headroom for Mosaic internal scratch
    return int(min(max(int(need_bytes * 1.25), 32 * 1024 * 1024), cap))


def inverted_residual_forward(x_nchw, params, *, inp, oup, stride, expand_ratio):
    use_res = (stride == 1) and (inp == oup)
    has_expand = expand_ratio != 1
    hidden = int(round(inp * expand_ratio))

    x = jnp.transpose(x_nchw, (0, 2, 3, 1))               # NCHW -> NHWC
    n, h, w, cin = x.shape
    ho = (h + 2 - 3) // stride + 1
    wo = (w + 2 - 3) // stride + 1

    wd, bd = params["dw"]
    wpj, bpj = params["project"]

    args = [x]
    in_specs = [pl.BlockSpec((1, h, w, cin), lambda i: (i, 0, 0, 0))]
    weight_bytes = 0
    if has_expand:
        we, be = params["expand"]
        args += [we, be.reshape(1, hidden)]
        in_specs += [
            pl.BlockSpec((cin, hidden), lambda i: (0, 0)),
            pl.BlockSpec((1, hidden), lambda i: (0, 0)),
        ]
        weight_bytes += we.size * we.dtype.itemsize + be.size * 4
    args += [wd, bd.reshape(1, hidden), wpj, bpj.reshape(1, oup)]
    in_specs += [
        pl.BlockSpec((3, 3, hidden), lambda i: (0, 0, 0)),
        pl.BlockSpec((1, hidden), lambda i: (0, 0)),
        pl.BlockSpec((hidden, oup), lambda i: (0, 0)),
        pl.BlockSpec((1, oup), lambda i: (0, 0)),
    ]
    weight_bytes += wd.size * 4 + hidden * 4 + wpj.size * wpj.dtype.itemsize + oup * 4

    # VMEM budget: double-buffered input/output blocks + weights + padded hidden
    # scratch + in-kernel temporaries (acc, taps, matmul operands/results).
    in_blk = h * w * cin * 4
    out_blk = ho * wo * oup * 4
    scratch_bytes = (h + 2) * (w + 2) * hidden * 4
    temp_bytes = 4 * h * w * hidden * 4
    need = 2 * (in_blk + out_blk + weight_bytes) + scratch_bytes + temp_bytes

    # TODO(synk): for large spatial extents (112x112 MobileNetV2 stages) add a
    # second parallel grid axis over output-row blocks with a 2-input-row halo
    # (restores DMA pipelining and v7x 2-TC sharding at batch 1), switch the
    # hidden scratch to bf16 on v7x, and emit a lane-dense (ho, wo*oup) output
    # slab when oup < 128; per-image tiles at these shapes fit VMEM comfortably.
    out = pl.pallas_call(
        functools.partial(_fused_block_kernel, stride=stride,
                          has_expand=has_expand, use_res=use_res),
        out_shape=jax.ShapeDtypeStruct((n, ho, wo, oup), x.dtype),
        grid=(n,),
        in_specs=in_specs,
        out_specs=pl.BlockSpec((1, ho, wo, oup), lambda i: (i, 0, 0, 0)),
        scratch_shapes=[pltpu.VMEM((h + 2, w + 2, hidden), jnp.float32)],
        compiler_params=pltpu.CompilerParams(
            dimension_semantics=("parallel",),             # 2 TensorCores on v7x
            vmem_limit_bytes=_vmem_limit_bytes(need),
        ),
    )(*args)

    return jnp.transpose(out, (0, 3, 1, 2))                # NHWC -> NCHW


# ------------------------- parameters (BN folded) ----------------------------

def init_inverted_residual_params(key, inp, oup, stride, expand_ratio, eps=1e-5):
    del stride
    hidden = int(round(inp * expand_ratio))
    ks = iter(jax.random.split(key, 16))

    def bn_params(c):
        gamma = jax.random.uniform(next(ks), (c,), minval=0.5, maxval=1.5)
        beta = 0.1 * jax.random.normal(next(ks), (c,))
        mean = 0.1 * jax.random.normal(next(ks), (c,))
        var = jax.random.uniform(next(ks), (c,), minval=0.5, maxval=1.5)
        return gamma, beta, mean, var

    def fold(w, bn, wdtype=jnp.float32):
        gamma, beta, mean, var = bn
        scale = gamma / jnp.sqrt(var + eps)
        return (w * scale).astype(wdtype), (beta - mean * scale).astype(jnp.float32)

    params = {}
    if expand_ratio != 1:
        w = 0.1 * jax.random.normal(next(ks), (hidden, inp, 1, 1))   # OIHW
        w = jnp.transpose(w[:, :, 0, 0], (1, 0))                     # (inp, hidden)
        params["expand"] = fold(w, bn_params(hidden), jnp.bfloat16)  # bf16 MXU weights
    wdw = 0.1 * jax.random.normal(next(ks), (hidden, 1, 3, 3))       # depthwise OIHW
    wdw = jnp.transpose(wdw[:, 0, :, :], (1, 2, 0))                  # (3, 3, hidden)
    params["dw"] = fold(wdw, bn_params(hidden))                      # f32 (VPU path)
    wp = 0.1 * jax.random.normal(next(ks), (oup, hidden, 1, 1))
    wp = jnp.transpose(wp[:, :, 0, 0], (1, 0))                       # (hidden, oup)
    params["project"] = fold(wp, bn_params(oup), jnp.bfloat16)       # bf16 MXU weights
    return params


# ------------------------- pure-JAX reference check --------------------------

def reference_forward(x_nchw, params, *, inp, oup, stride, expand_ratio):
    dn = ("NHWC", "HWIO", "NHWC")
    x = jnp.transpose(x_nchw, (0, 2, 3, 1))
    h = x
    if expand_ratio != 1:
        we, be = params["expand"]
        h = jax.lax.conv_general_dilated(
            h, we.astype(jnp.float32)[None, None], (1, 1), "SAME",
            dimension_numbers=dn) + be
        h = jnp.clip(h, 0.0, 6.0)
    wd, bd = params["dw"]
    c = wd.shape[-1]
    h = jax.lax.conv_general_dilated(
        h, wd[:, :, None, :], (stride, stride), ((1, 1), (1, 1)),
        dimension_numbers=dn, feature_group_count=c) + bd
    h = jnp.clip(h, 0.0, 6.0)
    wpj, bpj = params["project"]
    h = jax.lax.conv_general_dilated(
        h, wpj.astype(jnp.float32)[None, None], (1, 1), "SAME",
        dimension_numbers=dn) + bpj
    if stride == 1 and inp == oup:
        h = x + h
    return jnp.transpose(h, (0, 3, 1, 2))


# ----------------------------------- main ------------------------------------

if __name__ == "__main__":
    configs = [
        dict(inp=4, oup=4, stride=1, expand_ratio=4),    # expand + residual
        dict(inp=4, oup=8, stride=2, expand_ratio=4),    # expand + stride 2
        dict(inp=8, oup=8, stride=1, expand_ratio=1),    # no expand + residual
        dict(inp=32, oup=32, stride=1, expand_ratio=6),  # realistic channel widths
    ]
    N, H, W = 2, 16, 16
    key = jax.random.PRNGKey(0)

    for i, cfg in enumerate(configs):
        kx, kp, key = jax.random.split(key, 3)
        x = jax.random.normal(kx, (N, cfg["inp"], H, W), jnp.float32)
        params = init_inverted_residual_params(kp, **cfg)

        out = jax.block_until_ready(inverted_residual_forward(x, params, **cfg))
        ref = reference_forward(x, params, **cfg)

        ho = (H + 2 - 3) // cfg["stride"] + 1
        wo = (W + 2 - 3) // cfg["stride"] + 1
        assert out.shape == (N, cfg["oup"], ho, wo), (i, out.shape)
        # bf16 matmul inputs (f32 accumulation) vs the f32 reference: compare the
        # max abs error against the output scale.
        err = float(jnp.max(jnp.abs(out - ref)))
        scale = max(1.0, float(jnp.max(jnp.abs(ref))))
        assert err <= 2e-2 * scale, f"mismatch in config {i}: err={err}, scale={scale}"

    print("KERNEL_OK")
</pallas_src>

<mosaic_0001>
module attributes {stable_mosaic.version = 11 : i64} {
  func.func @_fused_block_kernel(%arg0: i32, %arg1: memref<1x16x16x4xf32, #tpu.memory_space<vmem>>, %arg2: memref<4x16xbf16, #tpu.memory_space<vmem>>, %arg3: memref<1x16xf32, #tpu.memory_space<vmem>>, %arg4: memref<3x3x16xf32, #tpu.memory_space<vmem>>, %arg5: memref<1x16xf32, #tpu.memory_space<vmem>>, %arg6: memref<16x4xbf16, #tpu.memory_space<vmem>>, %arg7: memref<1x4xf32, #tpu.memory_space<vmem>>, %arg8: memref<1x16x16x4xf32, #tpu.memory_space<vmem>>, %arg9: memref<18x18x16xf32, #tpu.memory_space<vmem>>) attributes {dimension_semantics = [#tpu.dimension_semantics<parallel>], iteration_bounds = array<i64: 2>, scalar_prefetch = 0 : i64, scratch_operands = 1 : i64, tpu.core_type = #tpu.core_type<tc>, window_params = [{transform_indices = @transform_0, window_bounds = array<i64: 1, 16, 16, 4>}, {pipeline_mode = #tpu.pipeline_mode<synchronous>, transform_indices = @transform_1, window_bounds = array<i64: 4, 16>}, {pipeline_mode = #tpu.pipeline_mode<synchronous>, transform_indices = @transform_2, window_bounds = array<i64: 1, 16>}, {pipeline_mode = #tpu.pipeline_mode<synchronous>, transform_indices = @transform_3, window_bounds = array<i64: 3, 3, 16>}, {pipeline_mode = #tpu.pipeline_mode<synchronous>, transform_indices = @transform_4, window_bounds = array<i64: 1, 16>}, {pipeline_mode = #tpu.pipeline_mode<synchronous>, transform_indices = @transform_5, window_bounds = array<i64: 16, 4>}, {pipeline_mode = #tpu.pipeline_mode<synchronous>, transform_indices = @transform_6, window_bounds = array<i64: 1, 4>}, {transform_indices = @transform_7, window_bounds = array<i64: 1, 16, 16, 4>}]} {
    %c0 = arith.constant 0 : index
    %c0_0 = arith.constant 0 : index
    %c0_1 = arith.constant 0 : index
    %c0_2 = arith.constant 0 : index
    %0 = vector.load %arg1[%c0, %c0_0, %c0_1, %c0_2] : memref<1x16x16x4xf32, #tpu.memory_space<vmem>>, vector<1x16x16x4xf32>
    %1 = vector.shape_cast %0 : vector<1x16x16x4xf32> to vector<16x16x4xf32>
    %2 = vector.shape_cast %1 : vector<16x16x4xf32> to vector<256x4xf32>
    %3 = arith.truncf %2 : vector<256x4xf32> to vector<256x4xbf16>
    %c0_3 = arith.constant 0 : index
    %c0_4 = arith.constant 0 : index
    %4 = vector.load %arg2[%c0_3, %c0_4] : memref<4x16xbf16, #tpu.memory_space<vmem>>, vector<4x16xbf16>
    %cst = arith.constant dense<0.000000e+00> : vector<256x16xf32>
    %5 = tpu.matmul %3, %4, %cst {dimension_numbers = #tpu.dot_dimension_numbers<[1], [0], [0], [1], [0, 0, 1, 1], [], []>} : vector<256x4xbf16>, vector<4x16xbf16>, vector<256x16xf32> -> vector<256x16xf32>
    %c0_5 = arith.constant 0 : index
    %c0_6 = arith.constant 0 : index
    %6 = vector.load %arg3[%c0_5, %c0_6] : memref<1x16xf32, #tpu.memory_space<vmem>>, vector<1x16xf32>
    %7 = vector.broadcast %6 : vector<1x16xf32> to vector<256x16xf32>
    %8 = arith.addf %5, %7 : vector<256x16xf32>
    %cst_7 = arith.constant 0.000000e+00 : f32
    %cst_8 = arith.constant 6.000000e+00 : f32
    %9 = vector.broadcast %cst_7 : f32 to vector<256x16xf32>
    %10 = arith.maximumf %9, %8 : vector<256x16xf32>
    %11 = vector.broadcast %cst_8 : f32 to vector<256x16xf32>
    %12 = arith.minimumf %11, %10 : vector<256x16xf32>
    %13 = vector.shape_cast %12 : vector<256x16xf32> to vector<16x16x16xf32>
    %cst_9 = arith.constant 0.000000e+00 : f32
    %14 = vector.broadcast %cst_9 : f32 to vector<1x18x16xf32>
    %c0_10 = arith.constant 0 : index
    %c0_11 = arith.constant 0 : index
    %c0_12 = arith.constant 0 : index
    %15 = vector.load %arg9[%c0_10, %c0_11, %c0_12] : memref<18x18x16xf32, #tpu.memory_space<vmem>>, vector<1x18x16xf32>
    tpu.vector_store %arg9[%c0_10, %c0_11, %c0_12], %14 {strides = array<i32>} : memref<18x18x16xf32, #tpu.memory_space<vmem>>, vector<1x18x16xf32>,
    %c17 = arith.constant 17 : index
    %c0_13 = arith.constant 0 : index
    %c0_14 = arith.constant 0 : index
    %16 = vector.load %arg9[%c17, %c0_13, %c0_14] : memref<18x18x16xf32, #tpu.memory_space<vmem>>, vector<1x18x16xf32>
    tpu.vector_store %arg9[%c17, %c0_13, %c0_14], %14 {strides = array<i32>} : memref<18x18x16xf32, #tpu.memory_space<vmem>>, vector<1x18x16xf32>,
    %cst_15 = arith.constant 0.000000e+00 : f32
    %17 = vector.broadcast %cst_15 : f32 to vector<16x1x16xf32>
    %c1 = arith.constant 1 : index
    %c0_16 = arith.constant 0 : index
    %c0_17 = arith.constant 0 : index
    %18 = vector.load %arg9[%c1, %c0_16, %c0_17] : memref<18x18x16xf32, #tpu.memory_space<vmem>>, vector<16x1x16xf32>
    tpu.vector_store %arg9[%c1, %c0_16, %c0_17], %17 {strides = array<i32>} : memref<18x18x16xf32, #tpu.memory_space<vmem>>, vector<16x1x16xf32>,
    %c1_18 = arith.constant 1 : index
    %c17_19 = arith.constant 17 : index
    %c0_20 = arith.constant 0 : index
    %19 = vector.load %arg9[%c1_18, %c17_19, %c0_20] : memref<18x18x16xf32, #tpu.memory_space<vmem>>, vector<16x1x16xf32>
    tpu.vector_store %arg9[%c1_18, %c17_19, %c0_20], %17 {strides = array<i32>} : memref<18x18x16xf32, #tpu.memory_space<vmem>>, vector<16x1x16xf32>,
    %c1_21 = arith.constant 1 : index
    %c1_22 = arith.constant 1 : index
    %c0_23 = arith.constant 0 : index
    %20 = vector.load %arg9[%c1_21, %c1_22, %c0_23] : memref<18x18x16xf32, #tpu.memory_space<vmem>>, vector<16x16x16xf32>
    tpu.vector_store %arg9[%c1_21, %c1_22, %c0_23], %13 {strides = array<i32>} : memref<18x18x16xf32, #tpu.memory_space<vmem>>, vector<16x16x16xf32>,
    %c0_24 = arith.constant 0 : index
    %c0_25 = arith.constant 0 : index
    %c0_26 = arith.constant 0 : index
    %21 = vector.load %arg4[%c0_24, %c0_25, %c0_26] : memref<3x3x16xf32, #tpu.memory_space<vmem>>, vector<3x3x16xf32>
    %c0_27 = arith.constant 0 : index
    %c0_28 = arith.constant 0 : index
    %c0_29 = arith.constant 0 : index
    %22 = vector.load %arg9[%c0_27, %c0_28, %c0_29] : memref<18x18x16xf32, #tpu.memory_space<vmem>>, vector<16x16x16xf32>
    %23 = vector.extract_strided_slice %21 {offsets = [0, 0, 0], sizes = [1, 1, 16], strides = [1, 1, 1]} : vector<3x3x16xf32> to vector<1x1x16xf32>
    %24 = vector.shape_cast %23 : vector<1x1x16xf32> to vector<16xf32>
    %25 = vector.shape_cast %24 : vector<16xf32> to vector<1x1x16xf32>
    %26 = vector.broadcast %25 : vector<1x1x16xf32> to vector<16x16x16xf32>
    %27 = arith.mulf %22, %26 : vector<16x16x16xf32>
    %c0_30 = arith.constant 0 : index
    %c1_31 = arith.constant 1 : index
    %c0_32 = arith.constant 0 : index
    %28 = vector.load %arg9[%c0_30, %c1_31, %c0_32] : memref<18x18x16xf32, #tpu.memory_space<vmem>>, vector<16x16x16xf32>
    %29 = vector.extract_strided_slice %21 {offsets = [0, 1, 0], sizes = [1, 1, 16], strides = [1, 1, 1]} : vector<3x3x16xf32> to vector<1x1x16xf32>
    %30 = vector.shape_cast %29 : vector<1x1x16xf32> to vector<16xf32>
    %31 = vector.shape_cast %30 : vector<16xf32> to vector<1x1x16xf32>
    %32 = vector.broadcast %31 : vector<1x1x16xf32> to vector<16x16x16xf32>
    %33 = arith.mulf %28, %32 : vector<16x16x16xf32>
    %34 = arith.addf %27, %33 : vector<16x16x16xf32>
    %c0_33 = arith.constant 0 : index
    %c2 = arith.constant 2 : index
    %c0_34 = arith.constant 0 : index
    %35 = vector.load %arg9[%c0_33, %c2, %c0_34] : memref<18x18x16xf32, #tpu.memory_space<vmem>>, vector<16x16x16xf32>
    %36 = vector.extract_strided_slice %21 {offsets = [0, 2, 0], sizes = [1, 1, 16], strides = [1, 1, 1]} : vector<3x3x16xf32> to vector<1x1x16xf32>
    %37 = vector.shape_cast %36 : vector<1x1x16xf32> to vector<16xf32>
    %38 = vector.shape_cast %37 : vector<16xf32> to vector<1x1x16xf32>
    %39 = vector.broadcast %38 : vector<1x1x16xf32> to vector<16x16x16xf32>
    %40 = arith.mulf %35, %39 : vector<16x16x16xf32>
    %41 = arith.addf %34, %40 : vector<16x16x16xf32>
    %c1_35 = arith.constant 1 : index
    %c0_36 = arith.constant 0 : index
    %c0_37 = arith.constant 0 : index
    %42 = vector.load %arg9[%c1_35, %c0_36, %c0_37] : memref<18x18x16xf32, #tpu.memory_space<vmem>>, vector<16x16x16xf32>
    %43 = vector.extract_strided_slice %21 {offsets = [1, 0, 0], sizes = [1, 1, 16], strides = [1, 1, 1]} : vector<3x3x16xf32> to vector<1x1x16xf32>
    %44 = vector.shape_cast %43 : vector<1x1x16xf32> to vector<16xf32>
    %45 = vector.shape_cast %44 : vector<16xf32> to vector<1x1x16xf32>
    %46 = vector.broadcast %45 : vector<1x1x16xf32> to vector<16x16x16xf32>
    %47 = arith.mulf %42, %46 : vector<16x16x16xf32>
    %48 = arith.addf %41, %47 : vector<16x16x16xf32>
    %c1_38 = arith.constant 1 : index
    %c1_39 = arith.constant 1 : index
    %c0_40 = arith.constant 0 : index
    %49 = vector.load %arg9[%c1_38, %c1_39, %c0_40] : memref<18x18x16xf32, #tpu.memory_space<vmem>>, vector<16x16x16xf32>
    %50 = vector.extract_strided_slice %21 {offsets = [1, 1, 0], sizes = [1, 1, 16], strides = [1, 1, 1]} : vector<3x3x16xf32> to vector<1x1x16xf32>
    %51 = vector.shape_cast %50 : vector<1x1x16xf32> to vector<16xf32>
    %52 = vector.shape_cast %51 : vector<16xf32> to vector<1x1x16xf32>
    %53 = vector.broadcast %52 : vector<1x1x16xf32> to vector<16x16x16xf32>
    %54 = arith.mulf %49, %53 : vector<16x16x16xf32>
    %55 = arith.addf %48, %54 : vector<16x16x16xf32>
    %c1_41 = arith.constant 1 : index
    %c2_42 = arith.constant 2 : index
    %c0_43 = arith.constant 0 : index
    %56 = vector.load %arg9[%c1_41, %c2_42, %c0_43] : memref<18x18x16xf32, #tpu.memory_space<vmem>>, vector<16x16x16xf32>
    %57 = vector.extract_strided_slice %21 {offsets = [1, 2, 0], sizes = [1, 1, 16], strides = [1, 1, 1]} : vector<3x3x16xf32> to vector<1x1x16xf32>
    %58 = vector.shape_cast %57 : vector<1x1x16xf32> to vector<16xf32>
    %59 = vector.shape_cast %58 : vector<16xf32> to vector<1x1x16xf32>
    %60 = vector.broadcast %59 : vector<1x1x16xf32> to vector<16x16x16xf32>
    %61 = arith.mulf %56, %60 : vector<16x16x16xf32>
    %62 = arith.addf %55, %61 : vector<16x16x16xf32>
    %c2_44 = arith.constant 2 : index
    %c0_45 = arith.constant 0 : index
    %c0_46 = arith.constant 0 : index
    %63 = vector.load %arg9[%c2_44, %c0_45, %c0_46] : memref<18x18x16xf32, #tpu.memory_space<vmem>>, vector<16x16x16xf32>
    %64 = vector.extract_strided_slice %21 {offsets = [2, 0, 0], sizes = [1, 1, 16], strides = [1, 1, 1]} : vector<3x3x16xf32> to vector<1x1x16xf32>
    %65 = vector.shape_cast %64 : vector<1x1x16xf32> to vector<16xf32>
    %66 = vector.shape_cast %65 : vector<16xf32> to vector<1x1x16xf32>
    %67 = vector.broadcast %66 : vector<1x1x16xf32> to vector<16x16x16xf32>
    %68 = arith.mulf %63, %67 : vector<16x16x16xf32>
    %69 = arith.addf %62, %68 : vector<16x16x16xf32>
    %c2_47 = arith.constant 2 : index
    %c1_48 = arith.constant 1 : index
    %c0_49 = arith.constant 0 : index
    %70 = vector.load %arg9[%c2_47, %c1_48, %c0_49] : memref<18x18x16xf32, #tpu.memory_space<vmem>>, vector<16x16x16xf32>
    %71 = vector.extract_strided_slice %21 {offsets = [2, 1, 0], sizes = [1, 1, 16], strides = [1, 1, 1]} : vector<3x3x16xf32> to vector<1x1x16xf32>
    %72 = vector.shape_cast %71 : vector<1x1x16xf32> to vector<16xf32>
    %73 = vector.shape_cast %72 : vector<16xf32> to vector<1x1x16xf32>
    %74 = vector.broadcast %73 : vector<1x1x16xf32> to vector<16x16x16xf32>
    %75 = arith.mulf %70, %74 : vector<16x16x16xf32>
    %76 = arith.addf %69, %75 : vector<16x16x16xf32>
    %c2_50 = arith.constant 2 : index
    %c2_51 = arith.constant 2 : index
    %c0_52 = arith.constant 0 : index
    %77 = vector.load %arg9[%c2_50, %c2_51, %c0_52] : memref<18x18x16xf32, #tpu.memory_space<vmem>>, vector<16x16x16xf32>
    %78 = vector.extract_strided_slice %21 {offsets = [2, 2, 0], sizes = [1, 1, 16], strides = [1, 1, 1]} : vector<3x3x16xf32> to vector<1x1x16xf32>
    %79 = vector.shape_cast %78 : vector<1x1x16xf32> to vector<16xf32>
    %80 = vector.shape_cast %79 : vector<16xf32> to vector<1x1x16xf32>
    %81 = vector.broadcast %80 : vector<1x1x16xf32> to vector<16x16x16xf32>
    %82 = arith.mulf %77, %81 : vector<16x16x16xf32>
    %83 = arith.addf %76, %82 : vector<16x16x16xf32>
    %c0_53 = arith.constant 0 : index
    %c0_54 = arith.constant 0 : index
    %84 = vector.load %arg5[%c0_53, %c0_54] : memref<1x16xf32, #tpu.memory_space<vmem>>, vector<1x16xf32>
    %85 = vector.shape_cast %84 : vector<1x16xf32> to vector<1x1x16xf32>
    %86 = vector.broadcast %85 : vector<1x1x16xf32> to vector<16x16x16xf32>
    %87 = arith.addf %83, %86 : vector<16x16x16xf32>
    %cst_55 = arith.constant 0.000000e+00 : f32
    %cst_56 = arith.constant 6.000000e+00 : f32
    %88 = vector.broadcast %cst_55 : f32 to vector<16x16x16xf32>
    %89 = arith.maximumf %88, %87 : vector<16x16x16xf32>
    %90 = vector.broadcast %cst_56 : f32 to vector<16x16x16xf32>
    %91 = arith.minimumf %90, %89 : vector<16x16x16xf32>
    %92 = vector.shape_cast %91 : vector<16x16x16xf32> to vector<256x16xf32>
    %93 = arith.truncf %92 : vector<256x16xf32> to vector<256x16xbf16>
    %c0_57 = arith.constant 0 : index
    %c0_58 = arith.constant 0 : index
    %94 = vector.load %arg6[%c0_57, %c0_58] : memref<16x4xbf16, #tpu.memory_space<vmem>>, vector<16x4xbf16>
    %cst_59 = arith.constant dense<0.000000e+00> : vector<256x4xf32>
    %95 = tpu.matmul %93, %94, %cst_59 {dimension_numbers = #tpu.dot_dimension_numbers<[1], [0], [0], [1], [0, 0, 1, 1], [], []>} : vector<256x16xbf16>, vector<16x4xbf16>, vector<256x4xf32> -> vector<256x4xf32>
    %c0_60 = arith.constant 0 : index
    %c0_61 = arith.constant 0 : index
    %96 = vector.load %arg7[%c0_60, %c0_61] : memref<1x4xf32, #tpu.memory_space<vmem>>, vector<1x4xf32>
    %97 = vector.broadcast %96 : vector<1x4xf32> to vector<256x4xf32>
    %98 = arith.addf %95, %97 : vector<256x4xf32>
    %99 = vector.shape_cast %1 : vector<16x16x4xf32> to vector<256x4xf32>
    %100 = arith.addf %98, %99 : vector<256x4xf32>
    %101 = vector.shape_cast %100 : vector<256x4xf32> to vector<1x16x16x4xf32>
    %c0_62 = arith.constant 0 : index
    %c0_63 = arith.constant 0 : index
    %c0_64 = arith.constant 0 : index
    %c0_65 = arith.constant 0 : index
    %102 = vector.load %arg8[%c0_62, %c0_63, %c0_64, %c0_65] : memref<1x16x16x4xf32, #tpu.memory_space<vmem>>, vector<1x16x16x4xf32>
    tpu.vector_store %arg8[%c0_62, %c0_63, %c0_64, %c0_65], %101 {strides = array<i32>} : memref<1x16x16x4xf32, #tpu.memory_space<vmem>>, vector<1x16x16x4xf32>,
    return
  }
  func.func @transform_0(%arg0: i32) -> (i32, i32, i32, i32) {
    %c0_i32 = arith.constant 0 : i32
    %c0_i32_0 = arith.constant 0 : i32
    %c0_i32_1 = arith.constant 0 : i32
    %c0_i32_2 = arith.constant 0 : i32
    return %arg0, %c0_i32, %c0_i32_0, %c0_i32_1 : i32, i32, i32, i32
  }
  func.func @transform_1(%arg0: i32) -> (i32, i32) {
    %c0_i32 = arith.constant 0 : i32
    %c0_i32_0 = arith.constant 0 : i32
    %c0_i32_1 = arith.constant 0 : i32
    return %c0_i32, %c0_i32_0 : i32, i32
  }
  func.func @transform_2(%arg0: i32) -> (i32, i32) {
    %c0_i32 = arith.constant 0 : i32
    %c0_i32_0 = arith.constant 0 : i32
    %c0_i32_1 = arith.constant 0 : i32
    return %c0_i32, %c0_i32_0 : i32, i32
  }
  func.func @transform_3(%arg0: i32) -> (i32, i32, i32) {
    %c0_i32 = arith.constant 0 : i32
    %c0_i32_0 = arith.constant 0 : i32
    %c0_i32_1 = arith.constant 0 : i32
    %c0_i32_2 = arith.constant 0 : i32
    return %c0_i32, %c0_i32_0, %c0_i32_1 : i32, i32, i32
  }
  func.func @transform_4(%arg0: i32) -> (i32, i32) {
    %c0_i32 = arith.constant 0 : i32
    %c0_i32_0 = arith.constant 0 : i32
    %c0_i32_1 = arith.constant 0 : i32
    return %c0_i32, %c0_i32_0 : i32, i32
  }
  func.func @transform_5(%arg0: i32) -> (i32, i32) {
    %c0_i32 = arith.constant 0 : i32
    %c0_i32_0 = arith.constant 0 : i32
    %c0_i32_1 = arith.constant 0 : i32
    return %c0_i32, %c0_i32_0 : i32, i32
  }
  func.func @transform_6(%arg0: i32) -> (i32, i32) {
    %c0_i32 = arith.constant 0 : i32
    %c0_i32_0 = arith.constant 0 : i32
    %c0_i32_1 = arith.constant 0 : i32
    return %c0_i32, %c0_i32_0 : i32, i32
  }
  func.func @transform_7(%arg0: i32) -> (i32, i32, i32, i32) {
    %c0_i32 = arith.constant 0 : i32
    %c0_i32_0 = arith.constant 0 : i32
    %c0_i32_1 = arith.constant 0 : i32
    %c0_i32_2 = arith.constant 0 : i32
    return %arg0, %c0_i32, %c0_i32_0, %c0_i32_1 : i32, i32, i32, i32
  }
}

</mosaic_0001>

<bundles_post_ra>
// kernel: tpu_custom_call.1
= control target key start
LH: loop header
LB: loop body
LE: loop exit
PB: predicated region body
PF: predicated region fallthrough
CT: control target
= control target key end

     0   :  { %s2267_s24 = smov 0   ;;  %s3348_s0 = inlined_call_operand.vmem [shape: f32[2,16,16,4], index: 0, kind: input, shape index: {}]   ;;  %s3349_s1 = inlined_call_operand.vmem [shape: bf16[4,16], index: 1, kind: input, shape index: {}]   ;;  %s3350_s2 = inlined_call_operand.vmem [shape: f32[1,16], index: 2, kind: input, shape index: {}]   ;;  %s3351_s3 = inlined_call_operand.vmem [shape: f32[3,3,16], index: 3, kind: input, shape index: {}]   ;;  %s3352_s4 = inlined_call_operand.vmem [shape: f32[1,16], index: 4, kind: input, shape index: {}]   ;;  %s3353_s5 = inlined_call_operand.vmem [shape: bf16[16,4], index: 5, kind: input, shape index: {}]   ;;  %s3354_s6 = inlined_call_operand.vmem [shape: f32[1,4], index: 6, kind: input, shape index: {}]   ;;  %s3355_s7 = inlined_call_operand.vmem [shape: f32[2,16,16,4], index: 7, kind: output, shape index: {}]  }
   0x1 LB: > { %s2023_s25 = sadd.s32 4294967295, %s2224_s24   ;;  %p2027_p0 = scmp.ge.s32.totalorder %s2224_s24, 1  ;;  %s2224_s24 = sphi %s2267_s24, %s17_s24  }
   0x2   : > { %p237_p1 = scmp.lt.s32.totalorder %s2224_s24, 3 }
   0x4   : > { %p238_p2 = pnand %p2027_p0, %p237_p1 }
   0x5   : > { %p269_p3 = scmp.lt.s32.totalorder (!%p238_p2), %s2023_s25, 1 }
   0x6   : > { %241 = sbr.rel (%p238_p2) target bundleno = 623 (0x26f), region = 48 }
   0xb   : > { %v328_v0 = vld [vmem:[%s3349_s1] sm:$0x3]  ;;  %vm385_vm0 = vcmask 1041408   ;;  %s3357_s25 = smov (!%p269_p3, %s2023_s25), 1  ;;  %vm336_vm1 = vcmask 31744   ;;  %vm614_vm2 = vcmask 130048   ;;  %v724_v52 = vlaneseq }
   0xc   : > { %2174 = vmatprep.subr.msk.bf16.mxu0 %vm385_vm0, %v328_v0  ;;  %v387_v1 = vsel %vm385_vm0, %v328_v0, 0  ;;  %s2070_s28 = sshll.u32 %s3357_s25, 8  ;;  %v2226_v50 = vmov 0.0   ;;  %vm624_vm3 = vcmask 122880   ;;  %vm617_vm4 = vcmask 123904   ;;  %v2184_v51 = vld [vmem:[%s3353_s5] sm:$0xff]  }
   0xd   : > { %2107 = vmatpush3.bf16.msra.mxu0 %v387_v1  ;;  %s2286_s8 = scalar_lea.vmem %s3348_s0, %s2070_s28  ;;  %615 = vst.msk [vmem:[#allocation2] sm:$0xff] %vm614_vm2, %v2226_v50  ;;  %616 = vst.msk [vmem:[#allocation2 + $0x8] sm:$0xff] %vm614_vm2, %v2226_v50  ;;  %2140 = vmatprep.subr.bf16.mxu1 %v2184_v51  ;;  %v725_v53 = vshrl.u32 %v724_v52, 7  ;;  %v2378_v55 = vld [vmem:[%s3350_s2] ss:$0 sm:$0xff]  ;;  %s3216_s30 = scalar_lea.vmem %s3355_s7, %s2070_s28 }
   0xe   : > { %v280_v2 = vld [vmem:[%s2286_s8] sm:$0xff]  ;;  %v281_v3 = vld [vmem:[%s2286_s8 + $0x8] sm:$0xff]  ;;  %v282_v4 = vld [vmem:[%s2286_s8 + $0x10] sm:$0xff]  ;;  %620 = vst.msk [vmem:[#allocation2 + $0x198] sm:$0xff] %vm614_vm2, %v2226_v50  ;;  %2141 = vmatpush3.bf16.msra.mxu1 %v2184_v51 }
   0xf   : > { %v312_v5 = vpack.c.bf16 %v281_v3, %v280_v2  ;;  %v283_v6 = vld [vmem:[%s2286_s8 + $0x18] sm:$0xff]  ;;  %v284_v7 = vld [vmem:[%s2286_s8 + $0x20] sm:$0xff]  ;;  %v285_v8 = vld [vmem:[%s2286_s8 + $0x28] sm:$0xff]  ;;  %621 = vst.msk [vmem:[#allocation2 + $0x1a0] sm:$0xff] %vm614_vm2, %v2226_v50  ;;  %v726_v54 = vsub.s32 0, %v725_v53  ;;  %v794_v57 = vsub.s32 1, %v725_v53 }
  0x10   : > { %v313_v9 = vpack.c.bf16 %v283_v6, %v282_v4  ;;  %v314_v10 = vpack.c.bf16 %v285_v8, %v284_v7  ;;  %v286_v11 = vld [vmem:[%s2286_s8 + $0x30] sm:$0xff]  ;;  %v287_v12 = vld [vmem:[%s2286_s8 + $0x38] sm:$0xff]  ;;  %v288_v13 = vld [vmem:[%s2286_s8 + $0x40] sm:$0xff]  ;;  %625 = vst.msk [vmem:[#allocation2 + $0x18] sm:$0x1] %vm624_vm3, %v2226_v50  ;;  %v894_v0 = vsub.s32 2, %v725_v53 }
  0x11   : > { %2108 = vmatprep.mubr.msk.bf16.mxu0 %vm336_vm1, %v312_v5  ;;  %v289_v14 = vld [vmem:[%s2286_s8 + $0x48] sm:$0xff]  ;;  %v315_v15 = vpack.c.bf16 %v287_v12, %v286_v11  ;;  %v290_v17 = vld [vmem:[%s2286_s8 + $0x50] sm:$0xff]  ;;  %v291_v18 = vld [vmem:[%s2286_s8 + $0x58] sm:$0xff]  ;;  %626 = vst.msk [vmem:[#allocation2 + $0x30] sm:$0x1] %vm624_vm3, %v2226_v50 }
  0x12   : > { %2109 = vmatmul.mubr.msk.bf16.vlgmr.msra.gmra.mxu0 %vm336_vm1, %v313_v9  ;;  %v316_v16 = vpack.c.bf16 %v289_v14, %v288_v13  ;;  %v292_v19 = vld [vmem:[%s2286_s8 + $0x60] sm:$0xff]  ;;  %v293_v20 = vld [vmem:[%s2286_s8 + $0x68] sm:$0xff]  ;;  %v317_v21 = vpack.c.bf16 %v291_v18, %v290_v17  ;;  %v294_v23 = vld [vmem:[%s2286_s8 + $0x70] sm:$0xff]  ;;  %641 = vst.msk [vmem:[#allocation2 + $0x29] sm:$0x1] %vm624_vm3, %v2226_v50 }
  0x13   : > { %2112 = vmatprep.mubr.msk.bf16.mxu0 %vm336_vm1, %v314_v10  ;;  %v318_v22 = vpack.c.bf16 %v293_v20, %v292_v19  ;;  %v295_v24 = vld [vmem:[%s2286_s8 + $0x78] sm:$0xff]  ;;  %v296_v25 = vld [vmem:[%s2286_s8 + $0x80] sm:$0xff]  ;;  %v297_v26 = vld [vmem:[%s2286_s8 + $0x88] sm:$0xff]  ;;  %642 = vst.msk [vmem:[#allocation2 + $0x41] sm:$0x1] %vm624_vm3, %v2226_v50 }
  0x14   : > { %v319_v27 = vpack.c.bf16 %v295_v24, %v294_v23  ;;  %v320_v28 = vpack.c.bf16 %v297_v26, %v296_v25  ;;  %v298_v29 = vld [vmem:[%s2286_s8 + $0x90] sm:$0xff]  ;;  %v299_v30 = vld [vmem:[%s2286_s8 + $0x98] sm:$0xff]  ;;  %v300_v31 = vld [vmem:[%s2286_s8 + $0xa0] sm:$0xff]  ;;  %627 = vst.msk [vmem:[#allocation2 + $0x48] sm:$0x1] %vm624_vm3, %v2226_v50 }
  0x15   : > { %v301_v32 = vld [vmem:[%s2286_s8 + $0xa8] sm:$0xff]  ;;  %v321_v33 = vpack.c.bf16 %v299_v30, %v298_v29  ;;  %v302_v35 = vld [vmem:[%s2286_s8 + $0xb0] sm:$0xff]  ;;  %v303_v36 = vld [vmem:[%s2286_s8 + $0xb8] sm:$0xff]  ;;  %628 = vst.msk [vmem:[#allocation2 + $0x60] sm:$0x1] %vm624_vm3, %v2226_v50 }
  0x16   : > { %v322_v34 = vpack.c.bf16 %v301_v32, %v300_v31  ;;  %v304_v37 = vld [vmem:[%s2286_s8 + $0xc0] sm:$0xff]  ;;  %v305_v38 = vld [vmem:[%s2286_s8 + $0xc8] sm:$0xff]  ;;  %v323_v39 = vpack.c.bf16 %v303_v36, %v302_v35  ;;  %v306_v41 = vld [vmem:[%s2286_s8 + $0xd0] sm:$0xff]  ;;  %629 = vst.msk [vmem:[#allocation2 + $0x78] sm:$0x1] %vm624_vm3, %v2226_v50 }
  0x17   : > { %v324_v40 = vpack.c.bf16 %v305_v38, %v304_v37  ;;  %v307_v42 = vld [vmem:[%s2286_s8 + $0xd8] sm:$0xff]  ;;  %v308_v43 = vld [vmem:[%s2286_s8 + $0xe0] sm:$0xff]  ;;  %v309_v44 = vld [vmem:[%s2286_s8 + $0xe8] sm:$0xff]  ;;  %630 = vst.msk [vmem:[#allocation2 + $0x90] sm:$0x1] %vm624_vm3, %v2226_v50 }
  0x18   : > { %v325_v45 = vpack.c.bf16 %v307_v42, %v306_v41  ;;  %v326_v46 = vpack.c.bf16 %v309_v44, %v308_v43  ;;  %v310_v47 = vld [vmem:[%s2286_s8 + $0xf0] sm:$0xff]  ;;  %v311_v48 = vld [vmem:[%s2286_s8 + $0xf8] sm:$0xff]  ;;  %631 = vst.msk [vmem:[#allocation2 + $0xa8] sm:$0x1] %vm624_vm3, %v2226_v50  ;;  %632 = vst.msk [vmem:[#allocation2 + $0xc0] sm:$0x1] %vm624_vm3, %v2226_v50 }
  0x19   : > { %v327_v49 = vpack.c.bf16 %v311_v48, %v310_v47  ;;  %633 = vst.msk [vmem:[#allocation2 + $0xd8] sm:$0x1] %vm624_vm3, %v2226_v50  ;;  %634 = vst.msk [vmem:[#allocation2 + $0xf0] sm:$0x1] %vm624_vm3, %v2226_v50  ;;  %v689_v56 = vld [vmem:[%s3351_s3] sm:$0x7] }
  0x1a   : > { %2113 = vmatmul.mubr.msk.bf16.gmra.mxu0 %vm336_vm1, %v315_v15  ;;  %635 = vst.msk [vmem:[#allocation2 + $0x108] sm:$0x1] %vm624_vm3, %v2226_v50  ;;  %636 = vst.msk [vmem:[#allocation2 + $0x120] sm:$0x1] %vm624_vm3, %v2226_v50  ;;  %v2384_v60 = vrot.slane %v689_v56, %v726_v54  ;;  %v692_v62 = vld [vmem:[#allocation2] sm:$0xff]  ;;  %v2386_v63 = vrot.slane %v689_v56, %v794_v57  ;;  %v693_v3 = vld [vmem:[#allocation2 + $0x8] sm:$0xff]  ;;  %v2394_v15 = vrot.slane %v689_v56, %v894_v0 }
  0x1b   : > { %2116 = vmatprep.mubr.msk.bf16.mxu0 %vm336_vm1, %v316_v16  ;;  %637 = vst.msk [vmem:[#allocation2 + $0x138] sm:$0x1] %vm624_vm3, %v2226_v50  ;;  %638 = vst.msk [vmem:[#allocation2 + $0x150] sm:$0x1] %vm624_vm3, %v2226_v50  ;;  %v760_v4 = vld [vmem:[#allocation2 + $0x1] sm:$0xff] }
  0x1c   : > { %639 = vst.msk [vmem:[#allocation2 + $0x168] sm:$0x1] %vm624_vm3, %v2226_v50  ;;  %640 = vst.msk [vmem:[#allocation2 + $0x180] sm:$0x1] %vm624_vm3, %v2226_v50  ;;  %v728_v10 = vmul.f32 %v2384_v60, %v692_v62  ;;  %v729_v12 = vmul.f32 %v2384_v60, %v693_v3  ;;  %v796_v13 = vmul.f32 %v2386_v63, %v760_v4  ;;  %v860_v19 = vld [vmem:[#allocation2 + $0x2] sm:$0xff] }
  0x1d   : > { %643 = vst.msk [vmem:[#allocation2 + $0x59] sm:$0x1] %vm624_vm3, %v2226_v50  ;;  %644 = vst.msk [vmem:[#allocation2 + $0x71] sm:$0x1] %vm624_vm3, %v2226_v50  ;;  %v690_v26 = vld [vmem:[%s3351_s3 + $0x4] sm:$0x7]  ;;  %v896_v30 = vmul.f32 %v2394_v15, %v860_v19 }
  0x1e   : > { %645 = vst.msk [vmem:[#allocation2 + $0x89] sm:$0x1] %vm624_vm3, %v2226_v50  ;;  %646 = vst.msk [vmem:[#allocation2 + $0xa1] sm:$0x1] %vm624_vm3, %v2226_v50  ;;  %v2412_v37 = vrot.slane %v690_v26, %v726_v54  ;;  %v2414_v38 = vrot.slane %v690_v26, %v794_v57 }
  0x1f   : > { %647 = vst.msk [vmem:[#allocation2 + $0xb9] sm:$0x1] %vm624_vm3, %v2226_v50  ;;  %648 = vst.msk [vmem:[#allocation2 + $0xd1] sm:$0x1] %vm624_vm3, %v2226_v50 }
  0x20   : > { %649 = vst.msk [vmem:[#allocation2 + $0xe9] sm:$0x1] %vm624_vm3, %v2226_v50  ;;  %650 = vst.msk [vmem:[#allocation2 + $0x101] sm:$0x1] %vm624_vm3, %v2226_v50 }
  0x21   : > { %651 = vst.msk [vmem:[#allocation2 + $0x119] sm:$0x1] %vm624_vm3, %v2226_v50  ;;  %652 = vst.msk [vmem:[#allocation2 + $0x131] sm:$0x1] %vm624_vm3, %v2226_v50 }
  0x22   : > { %2117 = vmatmul.mubr.msk.bf16.gmra.mxu0 %vm336_vm1, %v317_v21  ;;  %653 = vst.msk [vmem:[#allocation2 + $0x149] sm:$0x1] %vm624_vm3, %v2226_v50  ;;  %654 = vst.msk [vmem:[#allocation2 + $0x161] sm:$0x1] %vm624_vm3, %v2226_v50 }
  0x23   : > { %2120 = vmatprep.mubr.msk.bf16.mxu0 %vm336_vm1, %v318_v22  ;;  %655 = vst.msk [vmem:[#allocation2 + $0x179] sm:$0x1] %vm624_vm3, %v2226_v50  ;;  %656 = vst.msk [vmem:[#allocation2 + $0x191] sm:$0x1] %vm624_vm3, %v2226_v50  ;;  %v691_v22 = vld [vmem:[%s3351_s3 + $0x8] sm:$0x7] }
  0x24   : > { %618 = vst.msk [vmem:[#allocation2 + $0x10] sm:$0x3] %vm617_vm4, %v2226_v50  ;;  %622 = vst.msk [vmem:[#allocation2 + $0x1a8] sm:$0x3] %vm617_vm4, %v2226_v50  ;;  %v2410_v35 = vrot.slane %v691_v22, %v726_v54 }
  0x2a   : > { %2121 = vmatmul.mubr.msk.bf16.gmra.mxu0 %vm336_vm1, %v319_v27 }
  0x2b   : > { %2124 = vmatprep.mubr.msk.bf16.mxu0 %vm336_vm1, %v320_v28  ;;  %v761_v5 = vld [vmem:[#allocation2 + $0x9] sm:$0xff]  ;;  %v828_v28 = vadd.f32 %v796_v13, %v728_v10 }
  0x2c   : > { %v797_v14 = vmul.f32 %v2386_v63, %v761_v5  ;;  %v861_v20 = vld [vmem:[#allocation2 + $0xa] sm:$0xff] }
  0x2d   : > { %v897_v31 = vmul.f32 %v2394_v15, %v861_v20  ;;  %v928_v44 = vadd.f32 %v896_v30, %v828_v28 }
  0x2e   : > { %v829_v29 = vadd.f32 %v797_v14, %v729_v12 }
  0x32   : > { %2125 = vmatmul.mubr.msk.bf16.gmra.mxu0 %vm336_vm1, %v321_v33 }
  0x33   : > { %2128 = vmatprep.mubr.msk.bf16.mxu0 %vm336_vm1, %v322_v34 }
  0x3a   : > { %2129 = vmatmul.mubr.msk.bf16.gmra.mxu0 %vm336_vm1, %v323_v39  ;;  %v2416_v39 = vrot.slane %v691_v22, %v794_v57 }
  0x3b   : > { %2132 = vmatprep.mubr.msk.bf16.mxu0 %vm336_vm1, %v324_v40 }
  0x42   : > { %2133 = vmatmul.mubr.msk.bf16.gmra.mxu0 %vm336_vm1, %v325_v45  ;;  %v929_v45 = vadd.f32 %v897_v31, %v829_v29 }
  0x43   : > { %2136 = vmatprep.mubr.msk.bf16.mxu0 %vm336_vm1, %v326_v46  ;;  %v2420_v46 = vrot.slane %v690_v26, %v894_v0 }
  0x4a   : > { %2137 = vmatmul.mubr.msk.bf16.gmra.mxu0 %vm336_vm1, %v327_v49  ;;  %v2422_v49 = vrot.slane %v691_v22, %v894_v0 }
  0xd2   : > { %v2110_v58 = vpop.f32.mrf.mxu0 }
  0xd3   : > { %v432_v59 = vadd.f32 %v2110_v58, %v2378_v55 }
  0xd4   : > { %v423_v61 = vpop.f32.mrf.mxu0 }
  0xd5   : > { %v552_v1 = vmax.f32 %v432_v59, 0.0  ;;  %v424_v2 = vadd.f32 %v2378_v55, %v423_v61 }
  0xd6   : > { %v2111_v6 = vpop.f32.mrf.mxu0 }
  0xd7   : > { %v584_v7 = vmin.f32 %v552_v1, 6.0  ;;  %v550_v8 = vmax.f32 %v424_v2, 0.0  ;;  %v435_v9 = vadd.f32 %v2111_v6, %v2378_v55 }
  0xd8   : > { %v426_v11 = vpop.f32.mrf.mxu0 }
  0xd9   : > { %659 = vst.msk [vmem:[#allocation2 + $0x31] sm:$0xff] %vm614_vm2, %v584_v7  ;;  %v582_v16 = vmin.f32 %v550_v8, 6.0  ;;  %v553_v17 = vmax.f32 %v435_v9, 0.0  ;;  %v427_v18 = vadd.f32 %v2378_v55, %v426_v11 }
  0xda   : > { %v2114_v21 = vpop.f32.mrf.mxu0 }
  0xdb   : > { %657 = vst.msk [vmem:[#allocation2 + $0x19] sm:$0xff] %vm614_vm2, %v582_v16  ;;  %v585_v23 = vmin.f32 %v553_v17, 6.0  ;;  %v551_v24 = vmax.f32 %v427_v18, 0.0  ;;  %v448_v25 = vadd.f32 %v2114_v21, %v2378_v55 }
  0xdc   : > { %v439_v27 = vpop.f32.mrf.mxu0 }
  0xdd   : > { %660 = vst.msk [vmem:[#allocation2 + $0x39] sm:$0xff] %vm614_vm2, %v585_v23  ;;  %v583_v32 = vmin.f32 %v551_v24, 6.0  ;;  %v556_v33 = vmax.f32 %v448_v25, 0.0  ;;  %v440_v34 = vadd.f32 %v2378_v55, %v439_v27 }
  0xde   : > { %v2115_v36 = vpop.f32.mrf.mxu0 }
  0xdf   : > { %658 = vst.msk [vmem:[#allocation2 + $0x21] sm:$0xff] %vm614_vm2, %v583_v32  ;;  %v588_v40 = vmin.f32 %v556_v33, 6.0  ;;  %v554_v41 = vmax.f32 %v440_v34, 0.0  ;;  %v451_v42 = vadd.f32 %v2115_v36, %v2378_v55 }
  0xe0   : > { %v442_v43 = vpop.f32.mrf.mxu0  ;;  %v1261_v47 = vld [vmem:[#allocation2 + $0x30] sm:$0xff] }
  0xe1   : > { %v1361_v48 = vld [vmem:[#allocation2 + $0x31] sm:$0xff]  ;;  %663 = vst.msk [vmem:[#allocation2 + $0x61] sm:$0xff] %vm614_vm2, %v588_v40  ;;  %v586_v50 = vmin.f32 %v554_v41, 6.0  ;;  %v557_v51 = vmax.f32 %v451_v42, 0.0  ;;  %v443_v52 = vadd.f32 %v2378_v55, %v442_v43  ;;  %v1297_v53 = vmul.f32 %v2410_v35, %v1261_v47 }
  0xe2   : > { %v2118_v54 = vpop.f32.mrf.mxu0  ;;  %v960_v56 = vld [vmem:[#allocation2 + $0x18] sm:$0xff]  ;;  %v2428_v58 = vmul.f32 %v2416_v39, %v1361_v48  ;;  %v2431_v59 = vmul.f32 %v1261_v47, %v2412_v37  ;;  %v2434_v61 = vmul.f32 %v1361_v48, %v2414_v38  ;;  %v2437_v62 = vmul.f32 %v1261_v47, %v2384_v60 }
  0xe3   : > { %v1060_v57 = vld [vmem:[#allocation2 + $0x19] sm:$0xff]  ;;  %661 = vst.msk [vmem:[#allocation2 + $0x49] sm:$0xff] %vm614_vm2, %v586_v50  ;;  %v589_v0 = vmin.f32 %v557_v51, 6.0  ;;  %v555_v1 = vmax.f32 %v443_v52, 0.0  ;;  %v464_v2 = vadd.f32 %v2118_v54, %v2378_v55  ;;  %v996_v3 = vmul.f32 %v2412_v37, %v960_v56 }
  0xe4   : > { %v455_v4 = vpop.f32.mrf.mxu0  ;;  %v1096_v5 = vmul.f32 %v2414_v38, %v1060_v57  ;;  %v2443_v6 = vld [vmem:[#allocation2 + $0x38] sm:$0xff]  ;;  %v730_v9 = vmul.f32 %v960_v56, %v2384_v60  ;;  %v798_v10 = vmul.f32 %v1060_v57, %v2386_v63  ;;  %v2452_v11 = vmul.f32 %v1361_v48, %v2386_v63 }
  0xe5   : > { %v2445_v7 = vld [vmem:[#allocation2 + $0x39] sm:$0xff]  ;;  %664 = vst.msk [vmem:[#allocation2 + $0x69] sm:$0xff] %vm614_vm2, %v589_v0  ;;  %v587_v12 = vmin.f32 %v555_v1, 6.0  ;;  %v560_v13 = vmax.f32 %v464_v2, 0.0  ;;  %v456_v14 = vadd.f32 %v2378_v55, %v455_v4  ;;  %v1028_v16 = vadd.f32 %v996_v3, %v928_v44 }
  0xe6   : > { %v2447_v8 = vld [vmem:[#allocation2 + $0x32] sm:$0xff]  ;;  %v2456_v17 = vld [vmem:[#allocation2 + $0x3a] sm:$0xff]  ;;  %v2119_v18 = vpop.f32.mrf.mxu0  ;;  %v1298_v22 = vmul.f32 %v2410_v35, %v2443_v6  ;;  %v1398_v23 = vmul.f32 %v2416_v39, %v2445_v7  ;;  %v1161_v30 = vld [vmem:[#allocation2 + $0x22] sm:$0xff]  ;;  %v830_v51 = vadd.f32 %v798_v10, %v730_v9 }
  0xe7   : > { %v961_v19 = vld [vmem:[#allocation2 + $0x20] sm:$0xff]  ;;  %v1497_v24 = vmul.f32 %v2422_v49, %v2447_v8  ;;  %v2466_v25 = vmul.f32 %v2422_v49, %v2456_v17  ;;  %662 = vst.msk [vmem:[#allocation2 + $0x51] sm:$0xff] %vm614_vm2, %v587_v12  ;;  %v592_v26 = vmin.f32 %v560_v13, 6.0  ;;  %v558_v27 = vmax.f32 %v456_v14, 0.0 }
  0xe8   : > { %v1061_v20 = vld [vmem:[#allocation2 + $0x21] sm:$0xff]  ;;  %v467_v28 = vadd.f32 %v2119_v18, %v2378_v55  ;;  %v997_v29 = vmul.f32 %v2412_v37, %v961_v19  ;;  %v458_v31 = vpop.f32.mrf.mxu0  ;;  %v1128_v33 = vadd.f32 %v1096_v5, %v1028_v16  ;;  %v1197_v36 = vmul.f32 %v2420_v46, %v1161_v30 }
  0xe9   : > { %v1160_v21 = vld [vmem:[#allocation2 + $0x1a] sm:$0xff]  ;;  %v1097_v32 = vmul.f32 %v2414_v38, %v1061_v20  ;;  %667 = vst.msk [vmem:[#allocation2 + $0x91] sm:$0xff] %vm614_vm2, %v592_v26  ;;  %v590_v40 = vmin.f32 %v558_v27, 6.0  ;;  %v459_v42 = vadd.f32 %v2378_v55, %v458_v31  ;;  %v731_v48 = vmul.f32 %v961_v19, %v2384_v60 }
  0xea   : > { %v1196_v34 = vmul.f32 %v2420_v46, %v1160_v21  ;;  %v561_v41 = vmax.f32 %v467_v28, 0.0  ;;  %v1029_v43 = vadd.f32 %v997_v29, %v929_v45  ;;  %v2122_v44 = vpop.f32.mrf.mxu0  ;;  %v799_v50 = vmul.f32 %v1061_v20, %v2386_v63  ;;  %v2492_v26 = vld [vmem:[%s3352_s4] ss:$0 sm:$0xff] }
  0xeb   : > { %665 = vst.msk [vmem:[#allocation2 + $0x79] sm:$0xff] %vm614_vm2, %v590_v40  ;;  %v559_v54 = vmax.f32 %v459_v42, 0.0  ;;  %v480_v56 = vadd.f32 %v2122_v44, %v2378_v55  ;;  %v898_v3 = vmul.f32 %v1160_v21, %v2394_v15  ;;  %v899_v45 = vmul.f32 %v1161_v30, %v2394_v15 }
  0xec   : > { %v1228_v47 = vadd.f32 %v1196_v34, %v1128_v33  ;;  %v593_v52 = vmin.f32 %v561_v41, 6.0  ;;  %v1129_v57 = vadd.f32 %v1097_v32, %v1029_v43  ;;  %v471_v0 = vpop.f32.mrf.mxu0  ;;  %v831_v2 = vadd.f32 %v799_v50, %v731_v48  ;;  %v2499_v34 = vld [vmem:[#allocation2 + $0x48] sm:$0xff] }
  0xed   : > { %v591_v4 = vmin.f32 %v559_v54, 6.0  ;;  %v564_v5 = vmax.f32 %v480_v56, 0.0  ;;  %v472_v9 = vadd.f32 %v2378_v55, %v471_v0  ;;  %v930_v14 = vadd.f32 %v898_v3, %v830_v51 }
  0xee   : > { %v1329_v1 = vadd.f32 %v1297_v53, %v1228_v47  ;;  %668 = vst.msk [vmem:[#allocation2 + $0x99] sm:$0xff] %vm614_vm2, %v593_v52  ;;  %v1229_v10 = vadd.f32 %v1197_v36, %v1129_v57  ;;  %v2123_v12 = vpop.f32.mrf.mxu0  ;;  %v931_v16 = vadd.f32 %v899_v45, %v831_v2  ;;  %v999_v53 = vmul.f32 %v2443_v6, %v2412_v37  ;;  %v2521_v2 = vld [vmem:[#allocation2 + $0x4a] sm:$0xff] }
  0xef   : > { %666 = vst.msk [vmem:[#allocation2 + $0x81] sm:$0xff] %vm614_vm2, %v591_v4  ;;  %v596_v18 = vmin.f32 %v564_v5, 6.0  ;;  %v562_v19 = vmax.f32 %v472_v9, 0.0  ;;  %v483_v20 = vadd.f32 %v2123_v12, %v2378_v55  ;;  %v1099_v30 = vmul.f32 %v2445_v7, %v2414_v38 }
  0xf0   : > { %v1429_v13 = vadd.f32 %v2428_v58, %v1329_v1  ;;  %v1330_v21 = vadd.f32 %v1298_v22, %v1229_v10  ;;  %v474_v27 = vpop.f32.mrf.mxu0  ;;  %v1030_v58 = vadd.f32 %v2431_v59, %v930_v14  ;;  %v1031_v29 = vadd.f32 %v999_v53, %v931_v16  ;;  %v2519_v1 = vld [vmem:[#allocation2 + $0x51] sm:$0xff] }
  0xf1   : > { %671 = vst.msk [vmem:[#allocation2 + $0xc1] sm:$0xff] %vm614_vm2, %v596_v18  ;;  %v594_v31 = vmin.f32 %v562_v19, 6.0  ;;  %v565_v32 = vmax.f32 %v483_v20, 0.0  ;;  %v475_v33 = vadd.f32 %v2378_v55, %v474_v27  ;;  %v1198_v59 = vmul.f32 %v2447_v8, %v2420_v46  ;;  %v2527_v16 = vld [vmem:[#allocation2 + $0x52] sm:$0xff] }
  0xf2   : > { %v1529_v28 = vadd.f32 %v1497_v24, %v1429_v13  ;;  %v1430_v22 = vadd.f32 %v1398_v23, %v1330_v21  ;;  %v2126_v36 = vpop.f32.mrf.mxu0  ;;  %v1130_v24 = vadd.f32 %v2434_v61, %v1030_v58  ;;  %v1131_v41 = vadd.f32 %v1099_v30, %v1031_v29  ;;  %v2508_v23 = vld [vmem:[#allocation2 + $0x50] sm:$0xff] }
  0xf3   : > { %669 = vst.msk [vmem:[#allocation2 + $0xa9] sm:$0xff] %vm614_vm2, %v594_v31  ;;  %v597_v42 = vmin.f32 %v565_v32, 6.0  ;;  %v563_v43 = vmax.f32 %v475_v33, 0.0  ;;  %v496_v44 = vadd.f32 %v2126_v36, %v2378_v55  ;;  %v1199_v51 = vmul.f32 %v2456_v17, %v2420_v46 }
  0xf4   : > { %v1568_v40 = vadd.f32 %v2492_v26, %v1529_v28  ;;  %v1530_v47 = vadd.f32 %v2466_v25, %v1430_v22  ;;  %v487_v48 = vpop.f32.mrf.mxu0  ;;  %v1230_v61 = vadd.f32 %v1198_v59, %v1130_v24  ;;  %v1299_v52 = vmul.f32 %v2410_v35, %v2499_v34  ;;  %v2517_v25 = vld [vmem:[#allocation2 + $0x49] sm:$0xff] }
  0xf5   : > { %672 = vst.msk [vmem:[#allocation2 + $0xc9] sm:$0xff] %vm614_vm2, %v597_v42  ;;  %v595_v54 = vmin.f32 %v563_v43, 6.0  ;;  %v568_v56 = vmax.f32 %v496_v44, 0.0  ;;  %v488_v57 = vadd.f32 %v2378_v55, %v487_v48  ;;  %v1231_v4 = vadd.f32 %v1199_v51, %v1131_v41 }
  0xf6   : > { %v1600_v50 = vmax.f32 %v1568_v40, 0.0  ;;  %v1569_v0 = vadd.f32 %v2492_v26, %v1530_v47  ;;  %v2127_v3 = vpop.f32.mrf.mxu0  ;;  %v1300_v5 = vmul.f32 %v2410_v35, %v2508_v23  ;;  %v1331_v9 = vadd.f32 %v1299_v52, %v1230_v61 }
  0xf7   : > { %670 = vst.msk [vmem:[#allocation2 + $0xb1] sm:$0xff] %vm614_vm2, %v595_v54  ;;  %v600_v10 = vmin.f32 %v568_v56, 6.0  ;;  %v566_v12 = vmax.f32 %v488_v57, 0.0  ;;  %v499_v13 = vadd.f32 %v2127_v3, %v2378_v55  ;;  %v1399_v19 = vmul.f32 %v2416_v39, %v2517_v25 }
  0xf8   : > { %v1632_v45 = vmin.f32 %v1600_v50, 6.0  ;;  %v1601_v14 = vmax.f32 %v1569_v0, 0.0  ;;  %v490_v53 = vpop.f32.mrf.mxu0  ;;  %v1332_v18 = vadd.f32 %v1300_v5, %v1231_v4  ;;  %v1400_v20 = vmul.f32 %v2416_v39, %v2519_v1 }
  0xf9   : > { %v1499_v21 = vmul.f32 %v2422_v49, %v2521_v2  ;;  %675 = vst.msk [vmem:[#allocation2 + $0xf1] sm:$0xff] %vm614_vm2, %v600_v10  ;;  %v598_v27 = vmin.f32 %v566_v12, 6.0  ;;  %v569_v28 = vmax.f32 %v499_v13, 0.0  ;;  %v491_v58 = vadd.f32 %v2378_v55, %v490_v53 }
  0xfa   : > { %v1633_v29 = vmin.f32 %v1601_v14, 6.0  ;;  %v2130_v30 = vpop.f32.mrf.mxu0  ;;  %v1431_v31 = vadd.f32 %v1399_v19, %v1331_v9  ;;  %v1432_v32 = vadd.f32 %v1400_v20, %v1332_v18  ;;  %v1500_v33 = vmul.f32 %v2422_v49, %v2527_v16 }
  0xfb   : > { %v733_v22 = vmul.f32 %v2443_v6, %v2384_v60  ;;  %673 = vst.msk [vmem:[#allocation2 + $0xd9] sm:$0xff] %vm614_vm2, %v598_v27  ;;  %v601_v36 = vmin.f32 %v569_v28, 6.0  ;;  %v567_v40 = vmax.f32 %v491_v58, 0.0  ;;  %v512_v24 = vadd.f32 %v2130_v30, %v2378_v55  ;;  %v2568_v58 = vld [vmem:[#allocation2 + $0x60] sm:$0xff] }
  0xfc   : > { %v1664_v41 = vpack.c.bf16 %v1633_v29, %v1632_v45  ;;  %v503_v59 = vpop.f32.mrf.mxu0  ;;  %v1531_v42 = vadd.f32 %v1499_v21, %v1431_v31  ;;  %v1532_v43 = vadd.f32 %v1500_v33, %v1432_v32  ;;  %v801_v44 = vmul.f32 %v2445_v7, %v2386_v63  ;;  %v2570_v29 = vld [vmem:[#allocation2 + $0x68] sm:$0xff] }
  0xfd   : > { %v832_v47 = vadd.f32 %v2452_v11, %v2437_v62  ;;  %676 = vst.msk [vmem:[#allocation2 + $0xf9] sm:$0xff] %vm614_vm2, %v601_v36  ;;  %v599_v48 = vmin.f32 %v567_v40, 6.0  ;;  %v572_v6 = vmax.f32 %v512_v24, 0.0  ;;  %v504_v50 = vadd.f32 %v2378_v55, %v503_v59  ;;  %v2576_v36 = vld [vmem:[#allocation2 + $0x61] sm:$0xff]  ;;  %v2578_v40 = vld [vmem:[#allocation2 + $0x69] sm:$0xff] }
  0xfe   : > { %2142 = vmatprep.mubr.msk.bf16.mxu1 %vm614_vm2, %v1664_v41  ;;  %v900_v51 = vmul.f32 %v2447_v8, %v2394_v15  ;;  %v2131_v61 = vpop.f32.mrf.mxu0  ;;  %v1570_v52 = vadd.f32 %v2492_v26, %v1531_v42  ;;  %v1571_v54 = vadd.f32 %v2492_v26, %v1532_v43  ;;  %v833_v7 = vadd.f32 %v801_v44, %v733_v22  ;;  %v2584_v43 = vld [vmem:[#allocation2 + $0x62] sm:$0xff]  ;;  %v2586_v44 = vld [vmem:[#allocation2 + $0x6a] sm:$0xff] }
  0xff   : > { %v901_v62 = vmul.f32 %v2456_v17, %v2394_v15  ;;  %674 = vst.msk [vmem:[#allocation2 + $0xe1] sm:$0xff] %vm614_vm2, %v599_v48  ;;  %v604_v11 = vmin.f32 %v572_v6, 6.0  ;;  %v570_v56 = vmax.f32 %v504_v50, 0.0  ;;  %v515_v57 = vadd.f32 %v2131_v61, %v2378_v55 }
 0x100   : > { %v932_v0 = vadd.f32 %v900_v51, %v832_v47  ;;  %v506_v3 = vpop.f32.mrf.mxu0  ;;  %v1602_v45 = vmax.f32 %v1570_v52, 0.0  ;;  %v1603_v4 = vmax.f32 %v1571_v54, 0.0  ;;  %v1000_v5 = vmul.f32 %v2499_v34, %v2412_v37 }
 0x101   : > { %v933_v8 = vadd.f32 %v901_v62, %v833_v7  ;;  %679 = vst.msk [vmem:[#allocation2 + $0x121] sm:$0xff] %vm614_vm2, %v604_v11  ;;  %v602_v9 = vmin.f32 %v570_v56, 6.0  ;;  %v573_v10 = vmax.f32 %v515_v57, 0.0  ;;  %v507_v17 = vadd.f32 %v2378_v55, %v506_v3 }
 0x102   : > { %v1001_v12 = vmul.f32 %v2508_v23, %v2412_v37  ;;  %v1634_v13 = vmin.f32 %v1602_v45, 6.0  ;;  %v1635_v14 = vmin.f32 %v1603_v4, 6.0  ;;  %v2134_v53 = vpop.f32.mrf.mxu0  ;;  %v1032_v18 = vadd.f32 %v1000_v5, %v932_v0 }
 0x103   : > { %v1100_v19 = vmul.f32 %v2517_v25, %v2414_v38  ;;  %677 = vst.msk [vmem:[#allocation2 + $0x109] sm:$0xff] %vm614_vm2, %v602_v9  ;;  %v605_v20 = vmin.f32 %v573_v10, 6.0  ;;  %v571_v21 = vmax.f32 %v507_v17, 0.0  ;;  %v528_v27 = vadd.f32 %v2134_v53, %v2378_v55 }
 0x104   : > { %v1033_v28 = vadd.f32 %v1001_v12, %v933_v8  ;;  %v1665_v30 = vpack.c.bf16 %v1635_v14, %v1634_v13  ;;  %v519_v31 = vpop.f32.mrf.mxu0  ;;  %v1101_v32 = vmul.f32 %v2519_v1, %v2414_v38  ;;  %v1200_v22 = vmul.f32 %v2521_v2, %v2420_v46 }
 0x105   : > { %v1132_v33 = vadd.f32 %v1100_v19, %v1032_v18  ;;  %680 = vst.msk [vmem:[#allocation2 + $0x129] sm:$0xff] %vm614_vm2, %v605_v20  ;;  %v603_v24 = vmin.f32 %v571_v21, 6.0  ;;  %v576_v41 = vmax.f32 %v528_v27, 0.0  ;;  %v520_v59 = vadd.f32 %v2378_v55, %v519_v31 }
 0x106   : > { %v1201_v42 = vmul.f32 %v2527_v16, %v2420_v46  ;;  %2143 = vmatmul.mubr.msk.bf16.vlgmr.msra.gmra.mxu1 %vm614_vm2, %v1665_v30  ;;  %v1133_v47 = vadd.f32 %v1101_v32, %v1033_v28  ;;  %v1301_v6 = vmul.f32 %v2410_v35, %v2568_v58  ;;  %v1302_v50 = vmul.f32 %v2410_v35, %v2570_v29  ;;  %v2135_v51 = vpop.f32.mrf.mxu0  ;;  %v2623_v32 = vld [vmem:[#allocation2 + $0x78] sm:$0xff] }
 0x107   : > { %v1232_v48 = vadd.f32 %v1200_v22, %v1132_v33  ;;  %678 = vst.msk [vmem:[#allocation2 + $0x111] sm:$0xff] %vm614_vm2, %v603_v24  ;;  %v608_v61 = vmin.f32 %v576_v41, 6.0  ;;  %v574_v52 = vmax.f32 %v520_v59, 0.0  ;;  %v1401_v54 = vmul.f32 %v2416_v39, %v2576_v36  ;;  %v2625_v33 = vld [vmem:[#allocation2 + $0x80] sm:$0xff] }
 0x108   : > { %v1402_v7 = vmul.f32 %v2416_v39, %v2578_v40  ;;  %v1233_v62 = vadd.f32 %v1201_v42, %v1133_v47  ;;  %v1501_v56 = vmul.f32 %v2422_v49, %v2584_v43  ;;  %v1502_v57 = vmul.f32 %v2422_v49, %v2586_v44  ;;  %v522_v0 = vpop.f32.mrf.mxu0  ;;  %v2627_v22 = vld [vmem:[#allocation2 + $0x79] sm:$0xff]  ;;  %v2637_v42 = vld [vmem:[#allocation2 + $0x81] sm:$0xff] }
 0x109   : > { %v1333_v11 = vadd.f32 %v1301_v6, %v1232_v48  ;;  %683 = vst.msk [vmem:[#allocation2 + $0x151] sm:$0xff] %vm614_vm2, %v608_v61  ;;  %v606_v3 = vmin.f32 %v574_v52, 6.0  ;;  %v531_v45 = vadd.f32 %v2135_v51, %v2378_v55  ;;  %v523_v4 = vadd.f32 %v2378_v55, %v522_v0  ;;  %v2642_v51 = vld [vmem:[#allocation2 + $0x7a] sm:$0xff]  ;;  %v2644_v61 = vld [vmem:[#allocation2 + $0x82] sm:$0xff] }
 0x10a   : > { %v734_v8 = vmul.f32 %v2499_v34, %v2384_v60  ;;  %v1334_v5 = vadd.f32 %v1302_v50, %v1233_v62  ;;  %v735_v10 = vmul.f32 %v2508_v23, %v2384_v60  ;;  %v802_v17 = vmul.f32 %v2517_v25, %v2386_v63  ;;  %v2138_v28 = vpop.f32.mrf.mxu0 }
 0x10b   : > { %v1433_v9 = vadd.f32 %v1401_v54, %v1333_v11  ;;  %681 = vst.msk [vmem:[#allocation2 + $0x139] sm:$0xff] %vm614_vm2, %v606_v3  ;;  %v577_v12 = vmax.f32 %v531_v45, 0.0  ;;  %v575_v13 = vmax.f32 %v523_v4, 0.0  ;;  %v803_v14 = vmul.f32 %v2519_v1, %v2386_v63 }
 0x10c   : > { %v902_v53 = vmul.f32 %v2521_v2, %v2394_v15  ;;  %v1434_v18 = vadd.f32 %v1402_v7, %v1334_v5  ;;  %v834_v19 = vadd.f32 %v802_v17, %v734_v8  ;;  %v903_v20 = vmul.f32 %v2527_v16, %v2394_v15  ;;  %v535_v11 = vpop.f32.mrf.mxu0 }
 0x10d   : > { %v1533_v34 = vadd.f32 %v1501_v56, %v1433_v9  ;;  %v609_v23 = vmin.f32 %v577_v12, 6.0  ;;  %v607_v21 = vmin.f32 %v575_v13, 6.0  ;;  %v835_v27 = vadd.f32 %v803_v14, %v735_v10 }
 0x10e   : > { %v1002_v25 = vmul.f32 %v2568_v58, %v2412_v37  ;;  %v1534_v30 = vadd.f32 %v1502_v57, %v1434_v18  ;;  %v934_v1 = vadd.f32 %v902_v53, %v834_v19  ;;  %v1003_v2 = vmul.f32 %v2570_v29, %v2412_v37 }
 0x10f   : > { %v1572_v31 = vadd.f32 %v2492_v26, %v1533_v34  ;;  %684 = vst.msk [vmem:[#allocation2 + $0x159] sm:$0xff] %vm614_vm2, %v609_v23  ;;  %682 = vst.msk [vmem:[#allocation2 + $0x141] sm:$0xff] %vm614_vm2, %v607_v21  ;;  %v935_v16 = vadd.f32 %v903_v20, %v835_v27  ;;  %v1102_v24 = vmul.f32 %v2576_v36, %v2414_v38 }
 0x110   : > { %v1103_v41 = vmul.f32 %v2578_v40, %v2414_v38  ;;  %v1202_v59 = vmul.f32 %v2584_v43, %v2420_v46  ;;  %v1573_v47 = vadd.f32 %v2492_v26, %v1534_v30  ;;  %v1034_v6 = vadd.f32 %v1002_v25, %v934_v1 }
 0x111   : > { %v1604_v48 = vmax.f32 %v1572_v31, 0.0  ;;  %v1203_v50 = vmul.f32 %v2586_v44, %v2420_v46  ;;  %v1035_v52 = vadd.f32 %v1003_v2, %v935_v16  ;;  %v1303_v54 = vmul.f32 %v2410_v35, %v2623_v32  ;;  %v2139_v31 = vpop.f32.mrf.mxu0 }
 0x112   : > { %v1304_v7 = vmul.f32 %v2410_v35, %v2625_v33  ;;  %v1403_v62 = vmul.f32 %v2416_v39, %v2627_v22  ;;  %v1605_v56 = vmax.f32 %v1573_v47, 0.0  ;;  %v1134_v0 = vadd.f32 %v1102_v24, %v1034_v6  ;;  %v2680_v24 = vld [vmem:[#allocation2 + $0x98] sm:$0xff] }
 0x113   : > { %v1636_v57 = vmin.f32 %v1604_v48, 6.0  ;;  %v1404_v3 = vmul.f32 %v2416_v39, %v2637_v42  ;;  %v1135_v45 = vadd.f32 %v1103_v41, %v1035_v52  ;;  %v1503_v4 = vmul.f32 %v2422_v49, %v2642_v51  ;;  %v2687_v48 = vld [vmem:[#allocation2 + $0x91] sm:$0xff]  ;;  %v2689_v6 = vld [vmem:[#allocation2 + $0x99] sm:$0xff] }
 0x114   : > { %v1504_v8 = vmul.f32 %v2422_v49, %v2644_v61  ;;  %v544_v5 = vadd.f32 %v2138_v28, %v2378_v55  ;;  %v1637_v9 = vmin.f32 %v1605_v56, 6.0  ;;  %v1234_v10 = vadd.f32 %v1202_v59, %v1134_v0 }
 0x115   : > { %v536_v17 = vadd.f32 %v2378_v55, %v535_v11  ;;  %v736_v12 = vmul.f32 %v2568_v58, %v2384_v60  ;;  %v1235_v13 = vadd.f32 %v1203_v50, %v1135_v45  ;;  %v737_v53 = vmul.f32 %v2570_v29, %v2384_v60  ;;  %v2697_v11 = vld [vmem:[#allocation2 + $0x9a] sm:$0xff]  ;;  %v538_v45 = vpop.f32.mrf.mxu0 }
 0x116   : > { %v580_v14 = vmax.f32 %v544_v5, 0.0  ;;  %v804_v18 = vmul.f32 %v2576_v36, %v2386_v63  ;;  %v1666_v34 = vpack.c.bf16 %v1637_v9, %v1636_v57  ;;  %v1335_v19 = vadd.f32 %v1303_v54, %v1234_v10 }
 0x117   : > { %v578_v20 = vmax.f32 %v536_v17, 0.0  ;;  %v805_v23 = vmul.f32 %v2578_v40, %v2386_v63  ;;  %v1336_v21 = vadd.f32 %v1304_v7, %v1235_v13  ;;  %v904_v58 = vmul.f32 %v2584_v43, %v2394_v15  ;;  %v2678_v43 = vld [vmem:[#allocation2 + $0x90] sm:$0xff] }
 0x118   : > { %v612_v27 = vmin.f32 %v580_v14, 6.0  ;;  %v836_v25 = vadd.f32 %v804_v18, %v736_v12  ;;  %2146 = vmatprep.mubr.msk.bf16.mxu1 %vm614_vm2, %v1666_v34  ;;  %v1435_v28 = vadd.f32 %v1403_v62, %v1335_v19  ;;  %v905_v36 = vmul.f32 %v2586_v44, %v2394_v15  ;;  %v2695_v62 = vld [vmem:[#allocation2 + $0x92] sm:$0xff] }
 0x119   : > { %v610_v30 = vmin.f32 %v578_v20, 6.0  ;;  %v837_v29 = vadd.f32 %v805_v23, %v737_v53  ;;  %v1436_v1 = vadd.f32 %v1404_v3, %v1336_v21  ;;  %v1004_v40 = vmul.f32 %v2623_v32, %v2412_v37 }
 0x11a   : > { %687 = vst.msk [vmem:[#allocation2 + $0x181] sm:$0xff] %vm614_vm2, %v612_v27  ;;  %v936_v2 = vadd.f32 %v904_v58, %v836_v25  ;;  %v1005_v16 = vmul.f32 %v2625_v33, %v2412_v37  ;;  %v1535_v41 = vadd.f32 %v1503_v4, %v1435_v28  ;;  %v1104_v44 = vmul.f32 %v2627_v22, %v2414_v38 }
 0x11b   : > { %685 = vst.msk [vmem:[#allocation2 + $0x169] sm:$0xff] %vm614_vm2, %v610_v30  ;;  %v937_v59 = vadd.f32 %v905_v36, %v837_v29  ;;  %v1105_v47 = vmul.f32 %v2637_v42, %v2414_v38  ;;  %v1536_v50 = vadd.f32 %v1504_v8, %v1436_v1  ;;  %v1204_v54 = vmul.f32 %v2642_v51, %v2420_v46 }
 0x11c   : > { %v1036_v52 = vadd.f32 %v1004_v40, %v936_v2  ;;  %v1205_v7 = vmul.f32 %v2644_v61, %v2420_v46  ;;  %v1574_v56 = vadd.f32 %v2492_v26, %v1535_v41  ;;  %v1305_v0 = vmul.f32 %v2410_v35, %v2678_v43 }
 0x11d   : > { %v1037_v57 = vadd.f32 %v1005_v16, %v937_v59  ;;  %v1306_v3 = vmul.f32 %v2410_v35, %v2680_v24  ;;  %v1575_v4 = vadd.f32 %v2492_v26, %v1536_v50  ;;  %v1405_v5 = vmul.f32 %v2416_v39, %v2687_v48  ;;  %v2727_v59 = vld [vmem:[#allocation2 + $0xa8] sm:$0xff] }
 0x11e   : > { %v1136_v8 = vadd.f32 %v1104_v44, %v1036_v52  ;;  %v1406_v9 = vmul.f32 %v2416_v39, %v2689_v6  ;;  %v1606_v10 = vmax.f32 %v1574_v56, 0.0  ;;  %v1505_v12 = vmul.f32 %v2422_v49, %v2695_v62  ;;  %v2744_v56 = vld [vmem:[#allocation2 + $0xb1] sm:$0xff] }
 0x11f   : > { %v1137_v17 = vadd.f32 %v1105_v47, %v1037_v57  ;;  %v1506_v13 = vmul.f32 %v2422_v49, %v2697_v11  ;;  %v1607_v14 = vmax.f32 %v1575_v4, 0.0  ;;  %v547_v18 = vadd.f32 %v2139_v31, %v2378_v55  ;;  %v2738_v47 = vld [vmem:[#allocation2 + $0xb0] sm:$0xff] }
 0x120   : > { %v1236_v53 = vadd.f32 %v1204_v54, %v1136_v8  ;;  %v539_v34 = vadd.f32 %v2378_v55, %v538_v45  ;;  %v1638_v19 = vmin.f32 %v1606_v10, 6.0  ;;  %v738_v23 = vmul.f32 %v2623_v32, %v2384_v60  ;;  %v2746_v57 = vld [vmem:[#allocation2 + $0xaa] sm:$0xff]  ;;  %v2755_v8 = vld [vmem:[#allocation2 + $0xb2] sm:$0xff] }
 0x121   : > { %v1237_v20 = vadd.f32 %v1205_v7, %v1137_v17  ;;  %v739_v21 = vmul.f32 %v2625_v33, %v2384_v60  ;;  %v1639_v27 = vmin.f32 %v1607_v14, 6.0  ;;  %v581_v58 = vmax.f32 %v547_v18, 0.0  ;;  %v2742_v7 = vld [vmem:[#allocation2 + $0xa9] sm:$0xff] }
 0x122   : > { %v1337_v25 = vadd.f32 %v1305_v0, %v1236_v53  ;;  %v579_v28 = vmax.f32 %v539_v34, 0.0  ;;  %v806_v29 = vmul.f32 %v2627_v22, %v2386_v63  ;;  %v807_v36 = vmul.f32 %v2637_v42, %v2386_v63 }
 0x123   : > { %v1338_v30 = vadd.f32 %v1306_v3, %v1237_v20  ;;  %v906_v55 = vmul.f32 %v2642_v51, %v2394_v15  ;;  %v1667_v31 = vpack.c.bf16 %v1639_v27, %v1638_v19  ;;  %v613_v32 = vmin.f32 %v581_v58, 6.0 }
 0x124   : > { %v1437_v1 = vadd.f32 %v1405_v5, %v1337_v25  ;;  %v611_v2 = vmin.f32 %v579_v28, 6.0  ;;  %v838_v33 = vadd.f32 %v806_v29, %v738_v23  ;;  %v839_v16 = vadd.f32 %v807_v36, %v739_v21 }
 0x125   : > { %v1438_v40 = vadd.f32 %v1406_v9, %v1338_v30  ;;  %v907_v41 = vmul.f32 %v2644_v61, %v2394_v15  ;;  %2147 = vmatmul.mubr.msk.bf16.gmra.mxu1 %vm614_vm2, %v1667_v31  ;;  %688 = vst.msk [vmem:[#allocation2 + $0x189] sm:$0xff] %vm614_vm2, %v613_v32  ;;  %v1006_v42 = vmul.f32 %v2678_v43, %v2412_v37 }
 0x126   : > { %v1537_v22 = vadd.f32 %v1505_v12, %v1437_v1  ;;  %686 = vst.msk [vmem:[#allocation2 + $0x171] sm:$0xff] %vm614_vm2, %v611_v2  ;;  %v1007_v51 = vmul.f32 %v2680_v24, %v2412_v37  ;;  %v1106_v44 = vmul.f32 %v2687_v48, %v2414_v38  ;;  %v938_v50 = vadd.f32 %v906_v55, %v838_v33  ;;  %v2782_v2 = vld [vmem:[#allocation2 + $0xc0] sm:$0xff] }
 0x127   : > { %v1538_v61 = vadd.f32 %v1506_v13, %v1438_v40  ;;  %v939_v52 = vadd.f32 %v907_v41, %v839_v16  ;;  %v1107_v54 = vmul.f32 %v2689_v6, %v2414_v38  ;;  %v1206_v3 = vmul.f32 %v2695_v62, %v2420_v46  ;;  %v2784_v40 = vld [vmem:[#allocation2 + $0xc8] sm:$0xff] }
 0x128   : > { %v1576_v0 = vadd.f32 %v2492_v26, %v1537_v22  ;;  %v1207_v45 = vmul.f32 %v2697_v11, %v2420_v46  ;;  %v1307_v4 = vmul.f32 %v2410_v35, %v2727_v59  ;;  %v1038_v9 = vadd.f32 %v1006_v42, %v938_v50  ;;  %v2792_v16 = vld [vmem:[#allocation2 + $0xc1] sm:$0xff]  ;;  %v2801_v50 = vld [vmem:[#allocation2 + $0xca] sm:$0xff] }
 0x129   : > { %v1577_v5 = vadd.f32 %v2492_v26, %v1538_v61  ;;  %v1039_v10 = vadd.f32 %v1007_v51, %v939_v52  ;;  %v1308_v17 = vmul.f32 %v2410_v35, %v2738_v47  ;;  %v1407_v13 = vmul.f32 %v2416_v39, %v2742_v7  ;;  %v2799_v61 = vld [vmem:[#allocation2 + $0xc2] sm:$0xff] }
 0x12a   : > { %v1608_v12 = vmax.f32 %v1576_v0, 0.0  ;;  %v1408_v14 = vmul.f32 %v2416_v39, %v2744_v56  ;;  %v1507_v53 = vmul.f32 %v2422_v49, %v2746_v57  ;;  %v1138_v34 = vadd.f32 %v1106_v44, %v1038_v9  ;;  %v2797_v44 = vld [vmem:[#allocation2 + $0xc9] sm:$0xff] }
 0x12b   : > { %v1609_v18 = vmax.f32 %v1577_v5, 0.0  ;;  %v1139_v19 = vadd.f32 %v1107_v54, %v1039_v10  ;;  %v1508_v20 = vmul.f32 %v2422_v49, %v2755_v8  ;;  %v740_v21 = vmul.f32 %v2678_v43, %v2384_v60 }
 0x12c   : > { %v1640_v23 = vmin.f32 %v1608_v12, 6.0  ;;  %v741_v27 = vmul.f32 %v2680_v24, %v2384_v60  ;;  %v808_v25 = vmul.f32 %v2687_v48, %v2386_v63  ;;  %v1238_v28 = vadd.f32 %v1206_v3, %v1138_v34 }
 0x12d   : > { %v1641_v58 = vmin.f32 %v1609_v18, 6.0  ;;  %v1239_v30 = vadd.f32 %v1207_v45, %v1139_v19  ;;  %v809_v29 = vmul.f32 %v2689_v6, %v2386_v63  ;;  %v908_v55 = vmul.f32 %v2695_v62, %v2394_v15 }
 0x12e   : > { %v840_v36 = vadd.f32 %v808_v25, %v740_v21  ;;  %v909_v31 = vmul.f32 %v2697_v11, %v2394_v15  ;;  %v1008_v43 = vmul.f32 %v2727_v59, %v2412_v37  ;;  %v1339_v1 = vadd.f32 %v1307_v4, %v1238_v28 }
 0x12f   : > { %v1668_v24 = vpack.c.bf16 %v1641_v58, %v1640_v23  ;;  %v1340_v32 = vadd.f32 %v1308_v17, %v1239_v30  ;;  %v841_v48 = vadd.f32 %v809_v29, %v741_v27  ;;  %v1009_v6 = vmul.f32 %v2738_v47, %v2412_v37 }
 0x130   : > { %v940_v33 = vadd.f32 %v908_v55, %v840_v36  ;;  %v1108_v62 = vmul.f32 %v2742_v7, %v2414_v38  ;;  %v1109_v11 = vmul.f32 %v2744_v56, %v2414_v38  ;;  %v1439_v41 = vadd.f32 %v1407_v13, %v1339_v1 }
 0x131   : > { %2150 = vmatprep.mubr.msk.bf16.mxu1 %vm614_vm2, %v1668_v24  ;;  %v1440_v22 = vadd.f32 %v1408_v14, %v1340_v32  ;;  %v941_v42 = vadd.f32 %v909_v31, %v841_v48  ;;  %v1208_v51 = vmul.f32 %v2746_v57, %v2420_v46  ;;  %v1209_v54 = vmul.f32 %v2755_v8, %v2420_v46  ;;  %v2835_v32 = vld [vmem:[#allocation2 + $0xd8] sm:$0xff] }
 0x132   : > { %v1040_v52 = vadd.f32 %v1008_v43, %v940_v33  ;;  %v1309_v0 = vmul.f32 %v2410_v35, %v2782_v2  ;;  %v1310_v3 = vmul.f32 %v2410_v35, %v2784_v40  ;;  %v1539_v45 = vadd.f32 %v1507_v53, %v1439_v41 }
 0x133   : > { %v1540_v4 = vadd.f32 %v1508_v20, %v1440_v22  ;;  %v1041_v5 = vadd.f32 %v1009_v6, %v941_v42  ;;  %v1409_v9 = vmul.f32 %v2416_v39, %v2792_v16  ;;  %v1410_v17 = vmul.f32 %v2416_v39, %v2797_v44 }
 0x134   : > { %v1140_v10 = vadd.f32 %v1108_v62, %v1040_v52  ;;  %v1509_v12 = vmul.f32 %v2422_v49, %v2799_v61  ;;  %v1510_v13 = vmul.f32 %v2422_v49, %v2801_v50  ;;  %v1578_v14 = vadd.f32 %v2492_v26, %v1539_v45  ;;  %v2843_v62 = vld [vmem:[#allocation2 + $0xd9] sm:$0xff] }
 0x135   : > { %v1579_v18 = vadd.f32 %v2492_v26, %v1540_v4  ;;  %v1141_v53 = vadd.f32 %v1109_v11, %v1041_v5  ;;  %v742_v34 = vmul.f32 %v2727_v59, %v2384_v60  ;;  %v743_v20 = vmul.f32 %v2738_v47, %v2384_v60  ;;  %v2849_v52 = vld [vmem:[#allocation2 + $0xda] sm:$0xff] }
 0x136   : > { %v1240_v19 = vadd.f32 %v1208_v51, %v1140_v10  ;;  %v810_v23 = vmul.f32 %v2742_v7, %v2386_v63  ;;  %v811_v21 = vmul.f32 %v2744_v56, %v2386_v63  ;;  %v1610_v27 = vmax.f32 %v1578_v14, 0.0  ;;  %v2847_v51 = vld [vmem:[#allocation2 + $0xe1] sm:$0xff] }
 0x137   : > { %v1611_v25 = vmax.f32 %v1579_v18, 0.0  ;;  %v1241_v58 = vadd.f32 %v1209_v54, %v1141_v53  ;;  %v910_v28 = vmul.f32 %v2746_v57, %v2394_v15  ;;  %v911_v59 = vmul.f32 %v2755_v8, %v2394_v15  ;;  %v2837_v57 = vld [vmem:[#allocation2 + $0xe0] sm:$0xff] }
 0x138   : > { %v1341_v30 = vadd.f32 %v1309_v0, %v1240_v19  ;;  %v842_v29 = vadd.f32 %v810_v23, %v742_v34  ;;  %v843_v36 = vadd.f32 %v811_v21, %v743_v20  ;;  %v1642_v55 = vmin.f32 %v1610_v27, 6.0  ;;  %v2851_v54 = vld [vmem:[#allocation2 + $0xe2] sm:$0xff] }
 0x139   : > { %v1643_v47 = vmin.f32 %v1611_v25, 6.0  ;;  %v1342_v31 = vadd.f32 %v1310_v3, %v1241_v58  ;;  %v1010_v7 = vmul.f32 %v2782_v2, %v2412_v37  ;;  %v1011_v1 = vmul.f32 %v2784_v40, %v2412_v37 }
 0x13a   : > { %v1441_v43 = vadd.f32 %v1409_v9, %v1341_v30  ;;  %v942_v56 = vadd.f32 %v910_v28, %v842_v29  ;;  %v943_v24 = vadd.f32 %v911_v59, %v843_v36  ;;  %v1110_v8 = vmul.f32 %v2792_v16, %v2414_v38 }
 0x13b   : > { %v1669_v48 = vpack.c.bf16 %v1643_v47, %v1642_v55  ;;  %v1442_v33 = vadd.f32 %v1410_v17, %v1342_v31  ;;  %v1111_v6 = vmul.f32 %v2797_v44, %v2414_v38  ;;  %v1210_v42 = vmul.f32 %v2799_v61, %v2420_v46 }
 0x13c   : > { %v1541_v11 = vadd.f32 %v1509_v12, %v1441_v43  ;;  %v1042_v41 = vadd.f32 %v1010_v7, %v942_v56  ;;  %v1043_v22 = vadd.f32 %v1011_v1, %v943_v24  ;;  %v1211_v3 = vmul.f32 %v2801_v50, %v2420_v46  ;;  %v2886_v56 = vld [vmem:[#allocation2 + $0xf0] sm:$0xff] }
 0x13d   : > { %2151 = vmatmul.mubr.msk.bf16.gmra.mxu1 %vm614_vm2, %v1669_v48  ;;  %v1542_v0 = vadd.f32 %v1510_v13, %v1442_v33  ;;  %v1311_v45 = vmul.f32 %v2410_v35, %v2835_v32  ;;  %v1312_v4 = vmul.f32 %v2410_v35, %v2837_v57  ;;  %v1411_v17 = vmul.f32 %v2416_v39, %v2843_v62  ;;  %v2894_v33 = vld [vmem:[#allocation2 + $0xf1] sm:$0xff] }
 0x13e   : > { %v1580_v5 = vadd.f32 %v2492_v26, %v1541_v11  ;;  %v1142_v9 = vadd.f32 %v1110_v8, %v1042_v41  ;;  %v1143_v10 = vadd.f32 %v1111_v6, %v1043_v22  ;;  %v1412_v13 = vmul.f32 %v2416_v39, %v2847_v51  ;;  %v2896_v8 = vld [vmem:[#allocation2 + $0xf9] sm:$0xff] }
 0x13f   : > { %v1581_v12 = vadd.f32 %v2492_v26, %v1542_v0  ;;  %v1511_v14 = vmul.f32 %v2422_v49, %v2849_v52  ;;  %v1512_v18 = vmul.f32 %v2422_v49, %v2851_v54  ;;  %v744_v20 = vmul.f32 %v2782_v2, %v2384_v60 }
 0x140   : > { %v1612_v53 = vmax.f32 %v1580_v5, 0.0  ;;  %v1242_v34 = vadd.f32 %v1210_v42, %v1142_v9  ;;  %v1243_v19 = vadd.f32 %v1211_v3, %v1143_v10  ;;  %v745_v21 = vmul.f32 %v2784_v40, %v2384_v60  ;;  %v2903_v42 = vld [vmem:[#allocation2 + $0xf2] sm:$0xff] }
 0x141   : > { %v1613_v23 = vmax.f32 %v1581_v12, 0.0  ;;  %v812_v27 = vmul.f32 %v2792_v16, %v2386_v63  ;;  %v813_v25 = vmul.f32 %v2797_v44, %v2386_v63  ;;  %v912_v29 = vmul.f32 %v2799_v61, %v2394_v15  ;;  %v2888_v61 = vld [vmem:[#allocation2 + $0xf8] sm:$0xff] }
 0x142   : > { %v1644_v58 = vmin.f32 %v1612_v53, 6.0  ;;  %v1343_v28 = vadd.f32 %v1311_v45, %v1242_v34  ;;  %v1344_v30 = vadd.f32 %v1312_v4, %v1243_v19  ;;  %v913_v2 = vmul.f32 %v2801_v50, %v2394_v15 }
 0x143   : > { %v1645_v36 = vmin.f32 %v1613_v23, 6.0  ;;  %v844_v59 = vadd.f32 %v812_v27, %v744_v20  ;;  %v845_v55 = vadd.f32 %v813_v25, %v745_v21  ;;  %v1012_v16 = vmul.f32 %v2835_v32, %v2412_v37 }
 0x144   : > { %v1443_v47 = vadd.f32 %v1411_v17, %v1343_v28  ;;  %v1444_v40 = vadd.f32 %v1412_v13, %v1344_v30  ;;  %v1013_v44 = vmul.f32 %v2837_v57, %v2412_v37  ;;  %v1112_v50 = vmul.f32 %v2843_v62, %v2414_v38 }
 0x145   : > { %v1670_v31 = vpack.c.bf16 %v1645_v36, %v1644_v58  ;;  %v944_v7 = vadd.f32 %v912_v29, %v844_v59  ;;  %v945_v43 = vadd.f32 %v913_v2, %v845_v55  ;;  %v1113_v48 = vmul.f32 %v2847_v51, %v2414_v38 }
 0x146   : > { %v1543_v24 = vadd.f32 %v1511_v14, %v1443_v47  ;;  %v1544_v1 = vadd.f32 %v1512_v18, %v1444_v40  ;;  %v1212_v41 = vmul.f32 %v2849_v52, %v2420_v46  ;;  %v1213_v22 = vmul.f32 %v2851_v54, %v2420_v46  ;;  %v1478_v14 = vld [vmem:[#allocation2 + $0xfa] sm:$0xff]  ;;  %v2936_v40 = vld [vmem:[#allocation2 + $0x110] sm:$0xff] }
 0x147   : > { %2154 = vmatprep.mubr.msk.bf16.mxu1 %vm614_vm2, %v1670_v31  ;;  %v1044_v6 = vadd.f32 %v1012_v16, %v944_v7  ;;  %v1045_v11 = vadd.f32 %v1013_v44, %v945_v43  ;;  %v1313_v45 = vmul.f32 %v2410_v35, %v2886_v56  ;;  %v1314_v4 = vmul.f32 %v2410_v35, %v2888_v61  ;;  %v2938_v16 = vld [vmem:[#allocation2 + $0x109] sm:$0xff]  ;;  %v2947_v43 = vld [vmem:[#allocation2 + $0x111] sm:$0xff] }
 0x148   : > { %v1582_v0 = vadd.f32 %v2492_v26, %v1543_v24  ;;  %v1583_v3 = vadd.f32 %v2492_v26, %v1544_v1  ;;  %v1413_v10 = vmul.f32 %v2416_v39, %v2894_v33  ;;  %v1414_v17 = vmul.f32 %v2416_v39, %v2896_v8 }
 0x149   : > { %v1144_v5 = vadd.f32 %v1112_v50, %v1044_v6  ;;  %v1145_v9 = vadd.f32 %v1113_v48, %v1045_v11  ;;  %v1513_v18 = vmul.f32 %v2422_v49, %v2903_v42  ;;  %v746_v53 = vmul.f32 %v2835_v32, %v2384_v60  ;;  %v2950_v6 = vld [vmem:[#allocation2 + $0x10a] sm:$0xff] }
 0x14a   : > { %v1614_v12 = vmax.f32 %v1582_v0, 0.0  ;;  %v1615_v13 = vmax.f32 %v1583_v3, 0.0  ;;  %v747_v20 = vmul.f32 %v2837_v57, %v2384_v60  ;;  %v814_v23 = vmul.f32 %v2843_v62, %v2386_v63 }
 0x14b   : > { %v1244_v34 = vadd.f32 %v1212_v41, %v1144_v5  ;;  %v1245_v19 = vadd.f32 %v1213_v22, %v1145_v9  ;;  %v815_v25 = vmul.f32 %v2847_v51, %v2386_v63  ;;  %v914_v58 = vmul.f32 %v2849_v52, %v2394_v15  ;;  %v2934_v52 = vld [vmem:[#allocation2 + $0x108] sm:$0xff] }
 0x14c   : > { %v1646_v21 = vmin.f32 %v1614_v12, 6.0  ;;  %v1647_v27 = vmin.f32 %v1615_v13, 6.0  ;;  %v1514_v32 = vmul.f32 %v2422_v49, %v1478_v14  ;;  %v846_v29 = vadd.f32 %v814_v23, %v746_v53 }
 0x14d   : > { %v1345_v28 = vadd.f32 %v1313_v45, %v1244_v34  ;;  %v1346_v30 = vadd.f32 %v1314_v4, %v1245_v19  ;;  %v847_v59 = vadd.f32 %v815_v25, %v747_v20  ;;  %v915_v57 = vmul.f32 %v2851_v54, %v2394_v15  ;;  %v1480_v19 = vld [vmem:[#allocation2 + $0x112] sm:$0xff] }
 0x14e   : > { %v1671_v36 = vpack.c.bf16 %v1647_v27, %v1646_v21  ;;  %v1014_v62 = vmul.f32 %v2886_v56, %v2412_v37  ;;  %v946_v47 = vadd.f32 %v914_v58, %v846_v29  ;;  %v1015_v51 = vmul.f32 %v2888_v61, %v2412_v37 }
 0x14f   : > { %v1445_v55 = vadd.f32 %v1413_v10, %v1345_v28  ;;  %v1446_v2 = vadd.f32 %v1414_v17, %v1346_v30  ;;  %v947_v44 = vadd.f32 %v915_v57, %v847_v59  ;;  %v1114_v54 = vmul.f32 %v2894_v33, %v2414_v38 }
 0x150   : > { %2155 = vmatmul.mubr.msk.bf16.gmra.mxu1 %vm614_vm2, %v1671_v36  ;;  %v1115_v31 = vmul.f32 %v2896_v8, %v2414_v38  ;;  %v1214_v7 = vmul.f32 %v2903_v42, %v2420_v46  ;;  %v1046_v50 = vadd.f32 %v1014_v62, %v946_v47  ;;  %v1215_v48 = vmul.f32 %v1478_v14, %v2420_v46  ;;  %v2990_v47 = vld [vmem:[#allocation2 + $0x129] sm:$0xff] }
 0x151   : > { %v1545_v24 = vadd.f32 %v1513_v18, %v1445_v55  ;;  %v1546_v1 = vadd.f32 %v1514_v32, %v1446_v2  ;;  %v1047_v11 = vadd.f32 %v1015_v51, %v947_v44  ;;  %v1315_v41 = vmul.f32 %v2410_v35, %v2934_v52  ;;  %v2988_v2 = vld [vmem:[#allocation2 + $0x121] sm:$0xff] }
 0x152   : > { %v1316_v22 = vmul.f32 %v2410_v35, %v2936_v40  ;;  %v1415_v0 = vmul.f32 %v2416_v39, %v2938_v16  ;;  %v1146_v4 = vadd.f32 %v1114_v54, %v1046_v50  ;;  %v1416_v5 = vmul.f32 %v2416_v39, %v2947_v43 }
 0x153   : > { %v1584_v3 = vadd.f32 %v2492_v26, %v1545_v24  ;;  %v1585_v45 = vadd.f32 %v2492_v26, %v1546_v1  ;;  %v1147_v9 = vadd.f32 %v1115_v31, %v1047_v11  ;;  %v1515_v10 = vmul.f32 %v2422_v49, %v2950_v6  ;;  %v3005_v11 = vld [vmem:[%s3352_s4] ss:$0 sm:$0xff] }
 0x154   : > { %v748_v17 = vmul.f32 %v2886_v56, %v2384_v60  ;;  %v749_v12 = vmul.f32 %v2888_v61, %v2384_v60  ;;  %v1246_v53 = vadd.f32 %v1214_v7, %v1146_v4  ;;  %v816_v26 = vmul.f32 %v2894_v33, %v2386_v63  ;;  %v2996_v7 = vld [vmem:[#allocation2 + $0x122] sm:$0xff] }
 0x155   : > { %v1616_v13 = vmax.f32 %v1584_v3, 0.0  ;;  %v1617_v18 = vmax.f32 %v1585_v45, 0.0  ;;  %v1247_v34 = vadd.f32 %v1215_v48, %v1147_v9  ;;  %v817_v20 = vmul.f32 %v2896_v8, %v2386_v63 }
 0x156   : > { %v916_v23 = vmul.f32 %v2903_v42, %v2394_v15  ;;  %v917_v21 = vmul.f32 %v1478_v14, %v2394_v15  ;;  %v1347_v25 = vadd.f32 %v1315_v41, %v1246_v53  ;;  %v848_v61 = vadd.f32 %v816_v26, %v748_v17  ;;  %v2980_v42 = vld [vmem:[#allocation2 + $0x120] sm:$0xff]  ;;  %v2982_v14 = vld [vmem:[#allocation2 + $0x128] sm:$0xff] }
 0x157   : > { %v1648_v56 = vmin.f32 %v1616_v13, 6.0  ;;  %v1649_v27 = vmin.f32 %v1617_v18, 6.0  ;;  %v1348_v58 = vadd.f32 %v1316_v22, %v1247_v34  ;;  %v849_v28 = vadd.f32 %v817_v20, %v749_v12 }
 0x158   : > { %v1016_v30 = vmul.f32 %v2934_v52, %v2412_v37  ;;  %v1017_v33 = vmul.f32 %v2936_v40, %v2412_v37  ;;  %v1447_v29 = vadd.f32 %v1415_v0, %v1347_v25  ;;  %v1516_v8 = vmul.f32 %v2422_v49, %v1480_v19 }
 0x159   : > { %v1672_v32 = vpack.c.bf16 %v1649_v27, %v1648_v56  ;;  %v948_v36 = vadd.f32 %v916_v23, %v848_v61  ;;  %v1448_v59 = vadd.f32 %v1416_v5, %v1348_v58  ;;  %v949_v57 = vadd.f32 %v917_v21, %v849_v28  ;;  %v1482_v5 = vld [vmem:[#allocation2 + $0x12a] sm:$0xff] }
 0x15a   : > { %v1116_v62 = vmul.f32 %v2938_v16, %v2414_v38  ;;  %v1117_v55 = vmul.f32 %v2947_v43, %v2414_v38  ;;  %v1547_v51 = vadd.f32 %v1515_v10, %v1447_v29  ;;  %v1216_v54 = vmul.f32 %v2950_v6, %v2420_v46 }
 0x15b   : > { %2158 = vmatprep.mubr.msk.bf16.mxu1 %vm614_vm2, %v1672_v32  ;;  %v1048_v44 = vadd.f32 %v1016_v30, %v948_v36  ;;  %v1217_v31 = vmul.f32 %v1480_v19, %v2420_v46  ;;  %v1548_v24 = vadd.f32 %v1516_v8, %v1448_v59  ;;  %v1049_v1 = vadd.f32 %v1017_v33, %v949_v57  ;;  %v3031_v30 = vld [vmem:[#allocation2 + $0x138] sm:$0xff]  ;;  %v3035_v8 = vld [vmem:[#allocation2 + $0x140] sm:$0xff] }
 0x15c   : > { %v1317_v50 = vmul.f32 %v2410_v35, %v2980_v42  ;;  %v1318_v48 = vmul.f32 %v2410_v35, %v2982_v14  ;;  %v1586_v41 = vadd.f32 %v3005_v11, %v1547_v51  ;;  %v1417_v0 = vmul.f32 %v2416_v39, %v2988_v2  ;;  %v3037_v36 = vld [vmem:[#allocation2 + $0x139] sm:$0xff] }
 0x15d   : > { %v1148_v22 = vadd.f32 %v1116_v62, %v1048_v44  ;;  %v1418_v3 = vmul.f32 %v2416_v39, %v2990_v47  ;;  %v1587_v45 = vadd.f32 %v3005_v11, %v1548_v24  ;;  %v1149_v4 = vadd.f32 %v1117_v55, %v1049_v1  ;;  %v3043_v55 = vld [vmem:[#allocation2 + $0x141] sm:$0xff] }
 0x15e   : > { %v1517_v9 = vmul.f32 %v2422_v49, %v2996_v7  ;;  %v750_v10 = vmul.f32 %v2934_v52, %v2384_v60  ;;  %v1618_v17 = vmax.f32 %v1586_v41, 0.0  ;;  %v751_v13 = vmul.f32 %v2936_v40, %v2384_v60  ;;  %v3045_v51 = vld [vmem:[#allocation2 + $0x13a] sm:$0xff] }
 0x15f   : > { %v1248_v12 = vadd.f32 %v1216_v54, %v1148_v22  ;;  %v818_v18 = vmul.f32 %v2938_v16, %v2386_v63  ;;  %v1619_v53 = vmax.f32 %v1587_v45, 0.0  ;;  %v1249_v26 = vadd.f32 %v1217_v31, %v1149_v4 }
 0x160   : > { %v819_v34 = vmul.f32 %v2947_v43, %v2386_v63  ;;  %v918_v20 = vmul.f32 %v2950_v6, %v2394_v15  ;;  %v1650_v23 = vmin.f32 %v1618_v17, 6.0  ;;  %v1518_v52 = vmul.f32 %v2422_v49, %v1482_v5 }
 0x161   : > { %v1349_v21 = vadd.f32 %v1317_v50, %v1248_v12  ;;  %v850_v56 = vadd.f32 %v818_v18, %v750_v10  ;;  %v1651_v27 = vmin.f32 %v1619_v53, 6.0  ;;  %v1350_v25 = vadd.f32 %v1318_v48, %v1249_v26  ;;  %v1484_v18 = vld [vmem:[#allocation2 + $0x142] sm:$0xff] }
 0x162   : > { %v851_v61 = vadd.f32 %v819_v34, %v751_v13  ;;  %v919_v40 = vmul.f32 %v1480_v19, %v2394_v15  ;;  %v1018_v28 = vmul.f32 %v2980_v42, %v2412_v37  ;;  %v1019_v43 = vmul.f32 %v2982_v14, %v2412_v37 }
 0x163   : > { %v1449_v58 = vadd.f32 %v1417_v0, %v1349_v21  ;;  %v950_v16 = vadd.f32 %v918_v20, %v850_v56  ;;  %v1673_v6 = vpack.c.bf16 %v1651_v27, %v1650_v23  ;;  %v1450_v33 = vadd.f32 %v1418_v3, %v1350_v25 }
 0x164   : > { %v951_v32 = vadd.f32 %v919_v40, %v851_v61  ;;  %v1118_v29 = vmul.f32 %v2988_v2, %v2414_v38  ;;  %v1119_v57 = vmul.f32 %v2990_v47, %v2414_v38  ;;  %v1218_v62 = vmul.f32 %v2996_v7, %v2420_v46 }
 0x165   : > { %v1549_v19 = vadd.f32 %v1517_v9, %v1449_v58  ;;  %v1050_v59 = vadd.f32 %v1018_v28, %v950_v16  ;;  %2159 = vmatmul.mubr.msk.bf16.gmra.mxu1 %vm614_vm2, %v1673_v6  ;;  %v1550_v44 = vadd.f32 %v1518_v52, %v1450_v33  ;;  %v1219_v31 = vmul.f32 %v1482_v5, %v2420_v46  ;;  %v3085_v33 = vld [vmem:[#allocation2 + $0x151] sm:$0xff] }
 0x166   : > { %v1051_v54 = vadd.f32 %v1019_v43, %v951_v32  ;;  %v1319_v24 = vmul.f32 %v2410_v35, %v3031_v30  ;;  %v1320_v48 = vmul.f32 %v2410_v35, %v3035_v8  ;;  %v1419_v41 = vmul.f32 %v2416_v39, %v3037_v36 }
 0x167   : > { %v1588_v1 = vadd.f32 %v3005_v11, %v1549_v19  ;;  %v1150_v50 = vadd.f32 %v1118_v29, %v1050_v59  ;;  %v1589_v22 = vadd.f32 %v3005_v11, %v1550_v44  ;;  %v1420_v3 = vmul.f32 %v2416_v39, %v3043_v55 }
 0x168   : > { %v1151_v0 = vadd.f32 %v1119_v57, %v1051_v54  ;;  %v1519_v45 = vmul.f32 %v2422_v49, %v3045_v51  ;;  %v752_v10 = vmul.f32 %v2980_v42, %v2384_v60  ;;  %v753_v17 = vmul.f32 %v2982_v14, %v2384_v60  ;;  %v3090_v57 = vld [vmem:[#allocation2 + $0x159] sm:$0xff] }
 0x169   : > { %v1620_v4 = vmax.f32 %v1588_v1, 0.0  ;;  %v1250_v9 = vadd.f32 %v1218_v62, %v1150_v50  ;;  %v1621_v12 = vmax.f32 %v1589_v22, 0.0  ;;  %v820_v53 = vmul.f32 %v2988_v2, %v2386_v63 }
 0x16a   : > { %v1251_v13 = vadd.f32 %v1219_v31, %v1151_v0  ;;  %v821_v26 = vmul.f32 %v2990_v47, %v2386_v63  ;;  %v920_v23 = vmul.f32 %v2996_v7, %v2394_v15  ;;  %v921_v21 = vmul.f32 %v1482_v5, %v2394_v15  ;;  %v3077_v7 = vld [vmem:[#allocation2 + $0x150] sm:$0xff]  ;;  %v3079_v5 = vld [vmem:[#allocation2 + $0x158] sm:$0xff] }
 0x16b   : > { %v1652_v34 = vmin.f32 %v1620_v4, 6.0  ;;  %v1351_v20 = vadd.f32 %v1319_v24, %v1250_v9  ;;  %v1653_v42 = vmin.f32 %v1621_v12, 6.0  ;;  %v852_v56 = vadd.f32 %v820_v53, %v752_v10 }
 0x16c   : > { %v1352_v52 = vadd.f32 %v1320_v48, %v1251_v13  ;;  %v853_v14 = vadd.f32 %v821_v26, %v753_v17  ;;  %v1520_v25 = vmul.f32 %v2422_v49, %v1484_v18  ;;  %v1020_v2 = vmul.f32 %v3031_v30, %v2412_v37  ;;  %v1486_v17 = vld [vmem:[#allocation2 + $0x15a] sm:$0xff] }
 0x16d   : > { %v1451_v27 = vadd.f32 %v1419_v41, %v1351_v20  ;;  %v1021_v47 = vmul.f32 %v3035_v8, %v2412_v37  ;;  %v1674_v61 = vpack.c.bf16 %v1653_v42, %v1652_v34  ;;  %v952_v58 = vadd.f32 %v920_v23, %v852_v56  ;;  %v1485_v41 = vld [vmem:[#allocation2 + $0x152] sm:$0xff] }
 0x16e   : > { %v1452_v40 = vadd.f32 %v1420_v3, %v1352_v52  ;;  %v953_v16 = vadd.f32 %v921_v21, %v853_v14  ;;  %v1120_v43 = vmul.f32 %v3037_v36, %v2414_v38  ;;  %v1121_v6 = vmul.f32 %v3043_v55, %v2414_v38 }
 0x16f   : > { %v1551_v28 = vadd.f32 %v1519_v45, %v1451_v27  ;;  %2162 = vmatprep.mubr.msk.bf16.mxu1 %vm614_vm2, %v1674_v61  ;;  %v1052_v29 = vadd.f32 %v1020_v2, %v952_v58  ;;  %v1220_v59 = vmul.f32 %v3045_v51, %v2420_v46  ;;  %v1221_v44 = vmul.f32 %v1484_v18, %v2420_v46  ;;  %v3120_v2 = vld [vmem:[#allocation2 + $0x170] sm:$0xff] }
 0x170   : > { %v1552_v32 = vadd.f32 %v1520_v25, %v1452_v40  ;;  %v1053_v19 = vadd.f32 %v1021_v47, %v953_v16  ;;  %v1321_v54 = vmul.f32 %v2410_v35, %v3077_v7  ;;  %v1322_v31 = vmul.f32 %v2410_v35, %v3079_v5  ;;  %v3128_v40 = vld [vmem:[#allocation2 + $0x169] sm:$0xff] }
 0x171   : > { %v1590_v62 = vadd.f32 %v3005_v11, %v1551_v28  ;;  %v1152_v1 = vadd.f32 %v1120_v43, %v1052_v29  ;;  %v1421_v48 = vmul.f32 %v2416_v39, %v3085_v33  ;;  %v1422_v0 = vmul.f32 %v2416_v39, %v3090_v57 }
 0x172   : > { %v1591_v24 = vadd.f32 %v3005_v11, %v1552_v32  ;;  %v1153_v50 = vadd.f32 %v1121_v6, %v1053_v19  ;;  %v754_v3 = vmul.f32 %v3031_v30, %v2384_v60  ;;  %v755_v45 = vmul.f32 %v3035_v8, %v2384_v60  ;;  %v3132_v6 = vld [vmem:[#allocation2 + $0x171] sm:$0xff] }
 0x173   : > { %v1622_v22 = vmax.f32 %v1590_v62, 0.0  ;;  %v1252_v9 = vadd.f32 %v1220_v59, %v1152_v1  ;;  %v822_v12 = vmul.f32 %v3037_v36, %v2386_v63  ;;  %v1521_v53 = vmul.f32 %v2422_v49, %v1485_v41 }
 0x174   : > { %v1623_v4 = vmax.f32 %v1591_v24, 0.0  ;;  %v1253_v10 = vadd.f32 %v1221_v44, %v1153_v50  ;;  %v823_v26 = vmul.f32 %v3043_v55, %v2386_v63  ;;  %v922_v34 = vmul.f32 %v3045_v51, %v2394_v15  ;;  %v3118_v55 = vld [vmem:[#allocation2 + $0x168] sm:$0xff] }
 0x175   : > { %v1654_v13 = vmin.f32 %v1622_v22, 6.0  ;;  %v1353_v20 = vadd.f32 %v1321_v54, %v1252_v9  ;;  %v854_v8 = vadd.f32 %v822_v12, %v754_v3  ;;  %v1522_v21 = vmul.f32 %v2422_v49, %v1486_v17  ;;  %v1487_v9 = vld [vmem:[#allocation2 + $0x16a] sm:$0xff] }
 0x176   : > { %v1655_v30 = vmin.f32 %v1623_v4, 6.0  ;;  %v1354_v23 = vadd.f32 %v1322_v31, %v1253_v10  ;;  %v855_v42 = vadd.f32 %v823_v26, %v755_v45  ;;  %v923_v52 = vmul.f32 %v1484_v18, %v2394_v15 }
 0x177   : > { %v1022_v36 = vmul.f32 %v3077_v7, %v2412_v37  ;;  %v1453_v14 = vadd.f32 %v1421_v48, %v1353_v20  ;;  %v954_v25 = vadd.f32 %v922_v34, %v854_v8  ;;  %v1023_v47 = vmul.f32 %v3079_v5, %v2412_v37  ;;  %v1488_v34 = vld [vmem:[#allocation2 + $0x172] sm:$0xff] }
 0x178   : > { %v1675_v56 = vpack.c.bf16 %v1655_v30, %v1654_v13  ;;  %v1454_v27 = vadd.f32 %v1422_v0, %v1354_v23  ;;  %v955_v51 = vadd.f32 %v923_v52, %v855_v42  ;;  %v1122_v61 = vmul.f32 %v3085_v33, %v2414_v38  ;;  %v1289_v42 = vld [vmem:[#allocation2 + $0x180] sm:$0xff] }
 0x179   : > { %v1123_v18 = vmul.f32 %v3090_v57, %v2414_v38  ;;  %v1553_v58 = vadd.f32 %v1521_v53, %v1453_v14  ;;  %v1054_v28 = vadd.f32 %v1022_v36, %v954_v25  ;;  %v1222_v43 = vmul.f32 %v1485_v41, %v2420_v46  ;;  %v1290_v14 = vld [vmem:[#allocation2 + $0x188] sm:$0xff] }
 0x17a   : > { %2163 = vmatmul.mubr.msk.bf16.gmra.mxu1 %vm614_vm2, %v1675_v56  ;;  %v1554_v16 = vadd.f32 %v1522_v21, %v1454_v27  ;;  %v1055_v32 = vadd.f32 %v1023_v47, %v955_v51  ;;  %v1223_v29 = vmul.f32 %v1486_v17, %v2420_v46  ;;  %v1323_v19 = vmul.f32 %v2410_v35, %v3118_v55  ;;  %v1389_v27 = vld [vmem:[#allocation2 + $0x181] sm:$0xff] }
 0x17b   : > { %v1324_v59 = vmul.f32 %v2410_v35, %v3120_v2  ;;  %v1592_v62 = vadd.f32 %v3005_v11, %v1553_v58  ;;  %v1154_v54 = vadd.f32 %v1122_v61, %v1054_v28  ;;  %v1423_v31 = vmul.f32 %v2416_v39, %v3128_v40 }
 0x17c   : > { %v1593_v44 = vadd.f32 %v3005_v11, %v1554_v16  ;;  %v1155_v24 = vadd.f32 %v1123_v18, %v1055_v32  ;;  %v1424_v1 = vmul.f32 %v2416_v39, %v3132_v6  ;;  %v756_v50 = vmul.f32 %v3077_v7, %v2384_v60  ;;  %v1390_v18 = vld [vmem:[#allocation2 + $0x189] sm:$0xff] }
 0x17d   : > { %v757_v48 = vmul.f32 %v3079_v5, %v2384_v60  ;;  %v1624_v22 = vmax.f32 %v1592_v62, 0.0  ;;  %v1254_v3 = vadd.f32 %v1222_v43, %v1154_v54  ;;  %v824_v45 = vmul.f32 %v3085_v33, %v2386_v63 }
 0x17e   : > { %v1625_v0 = vmax.f32 %v1593_v44, 0.0  ;;  %v1255_v4 = vadd.f32 %v1223_v29, %v1155_v24  ;;  %v825_v10 = vmul.f32 %v3090_v57, %v2386_v63  ;;  %v924_v12 = vmul.f32 %v1485_v41, %v2394_v15 }
 0x17f   : > { %v925_v13 = vmul.f32 %v1486_v17, %v2394_v15  ;;  %v1656_v53 = vmin.f32 %v1624_v22, 6.0  ;;  %v1355_v26 = vadd.f32 %v1323_v19, %v1254_v3  ;;  %v856_v5 = vadd.f32 %v824_v45, %v756_v50  ;;  %v1490_v45 = vld [vmem:[#allocation2 + $0x18a] sm:$0xff] }
 0x180   : > { %v1657_v7 = vmin.f32 %v1625_v0, 6.0  ;;  %v1356_v30 = vadd.f32 %v1324_v59, %v1255_v4  ;;  %v857_v20 = vadd.f32 %v825_v10, %v757_v48  ;;  %v1024_v23 = vmul.f32 %v3118_v55, %v2412_v37 }
 0x181   : > { %v1025_v33 = vmul.f32 %v3120_v2, %v2412_v37  ;;  %v1455_v21 = vadd.f32 %v1423_v31, %v1355_v26  ;;  %v1523_v57 = vmul.f32 %v2422_v49, %v1487_v9  ;;  %v956_v41 = vadd.f32 %v924_v12, %v856_v5  ;;  %v1489_v31 = vld [vmem:[#allocation2 + $0x182] sm:$0xff] }
 0x182   : > { %v1676_v8 = vpack.c.bf16 %v1657_v7, %v1656_v53  ;;  %v1456_v17 = vadd.f32 %v1424_v1, %v1356_v30  ;;  %v1524_v52 = vmul.f32 %v2422_v49, %v1488_v34  ;;  %v957_v36 = vadd.f32 %v925_v13, %v857_v20 }
 0x183   : > { %v1124_v56 = vmul.f32 %v3128_v40, %v2414_v38  ;;  %v1555_v25 = vadd.f32 %v1523_v57, %v1455_v21  ;;  %v1056_v51 = vadd.f32 %v1024_v23, %v956_v41  ;;  %v1125_v47 = vmul.f32 %v3132_v6, %v2414_v38  ;;  %v1292_v41 = vld [vmem:[#allocation2 + $0x1a0] sm:$0xff] }
 0x184   : > { %2166 = vmatprep.mubr.msk.bf16.mxu1 %vm614_vm2, %v1676_v8  ;;  %v1224_v61 = vmul.f32 %v1487_v9, %v2420_v46  ;;  %v1556_v58 = vadd.f32 %v1524_v52, %v1456_v17  ;;  %v1057_v16 = vadd.f32 %v1025_v33, %v957_v36  ;;  %v1225_v28 = vmul.f32 %v1488_v34, %v2420_v46  ;;  %v1291_v33 = vld [vmem:[#allocation2 + $0x198] sm:$0xff] }
 0x185   : > { %v1325_v43 = vmul.f32 %v2410_v35, %v1289_v42  ;;  %v1594_v32 = vadd.f32 %v3005_v11, %v1555_v25  ;;  %v1156_v29 = vadd.f32 %v1124_v56, %v1056_v51  ;;  %v1326_v19 = vmul.f32 %v2410_v35, %v1290_v14  ;;  %v1391_v52 = vld [vmem:[#allocation2 + $0x199] sm:$0xff] }
 0x186   : > { %v1425_v59 = vmul.f32 %v2416_v39, %v1389_v27  ;;  %v1595_v62 = vadd.f32 %v3005_v11, %v1556_v58  ;;  %v1157_v44 = vadd.f32 %v1125_v47, %v1057_v16  ;;  %v1426_v54 = vmul.f32 %v2416_v39, %v1390_v18 }
 0x187   : > { %v758_v24 = vmul.f32 %v3118_v55, %v2384_v60  ;;  %v1626_v1 = vmax.f32 %v1594_v32, 0.0  ;;  %v1256_v50 = vadd.f32 %v1224_v61, %v1156_v29  ;;  %v759_v48 = vmul.f32 %v3120_v2, %v2384_v60  ;;  %v1491_v61 = vld [vmem:[#allocation2 + $0x19a] sm:$0xff] }
 0x188   : > { %v826_v22 = vmul.f32 %v3128_v40, %v2386_v63  ;;  %v1627_v0 = vmax.f32 %v1595_v62, 0.0  ;;  %v1257_v3 = vadd.f32 %v1225_v28, %v1157_v44  ;;  %v827_v4 = vmul.f32 %v3132_v6, %v2386_v63 }
 0x189   : > { %v926_v10 = vmul.f32 %v1487_v9, %v2394_v15  ;;  %v1658_v12 = vmin.f32 %v1626_v1, 6.0  ;;  %v1357_v13 = vadd.f32 %v1325_v43, %v1256_v50  ;;  %v1525_v55 = vmul.f32 %v2422_v49, %v1489_v31 }
 0x18a   : > { %v858_v53 = vadd.f32 %v826_v22, %v758_v24  ;;  %v1659_v7 = vmin.f32 %v1627_v0, 6.0  ;;  %v1358_v26 = vadd.f32 %v1326_v19, %v1257_v3  ;;  %v859_v5 = vadd.f32 %v827_v4, %v759_v48 }
 0x18b   : > { %v927_v60 = vmul.f32 %v1488_v34, %v2394_v15  ;;  %v1457_v2 = vadd.f32 %v1425_v59, %v1357_v13  ;;  %v1526_v40 = vmul.f32 %v2422_v49, %v1490_v45  ;;  %v1026_v20 = vmul.f32 %v1289_v42, %v2412_v37 }
 0x18c   : > { %v958_v30 = vadd.f32 %v926_v10, %v858_v53  ;;  %v1677_v23 = vpack.c.bf16 %v1659_v7, %v1658_v12  ;;  %v1458_v63 = vadd.f32 %v1426_v54, %v1358_v26  ;;  %v1027_v9 = vmul.f32 %v1290_v14, %v2412_v37  ;;  %v1392_v14 = vld [vmem:[#allocation2 + $0x1a1] sm:$0xff]  ;;  %v2186_v12 = vld [vmem:[%s2286_s8 + $0x10] sm:$0xff] }
 0x18d   : > { %v959_v6 = vadd.f32 %v927_v60, %v859_v5  ;;  %v1557_v8 = vadd.f32 %v1525_v55, %v1457_v2  ;;  %v1126_v57 = vmul.f32 %v1389_v27, %v2414_v38  ;;  %v1127_v17 = vmul.f32 %v1390_v18, %v2414_v38  ;;  %v1492_v18 = vld [vmem:[#allocation2 + $0x1a2] sm:$0xff]  ;;  %v2188_v2 = vld [vmem:[%s2286_s8 + $0x18] sm:$0xff] }
 0x18e   : > { %v1058_v21 = vadd.f32 %v1026_v20, %v958_v30  ;;  %2167 = vmatmul.mubr.msk.bf16.gmra.mxu1 %vm614_vm2, %v1677_v23  ;;  %v1558_v15 = vadd.f32 %v1526_v40, %v1458_v63  ;;  %v1226_v56 = vmul.f32 %v1489_v31, %v2420_v46  ;;  %v1327_v37 = vmul.f32 %v2410_v35, %v1291_v33  ;;  %v2187_v7 = vld [vmem:[%s2286_s8] sm:$0xff]  ;;  %v2189_v20 = vld [vmem:[%s2286_s8 + $0x8] sm:$0xff]  ;;  %v2190_v33 = vld [vmem:[%s2286_s8 + $0x30] sm:$0xff] }
 0x18f   : > { %v1059_v34 = vadd.f32 %v1027_v9, %v959_v6  ;;  %v1596_v42 = vadd.f32 %v3005_v11, %v1557_v8  ;;  %v1227_v27 = vmul.f32 %v1490_v45, %v2420_v46  ;;  %v1328_v47 = vmul.f32 %v2410_v35, %v1292_v41  ;;  %v2191_v41 = vld [vmem:[%s2286_s8 + $0x20] sm:$0xff] }
 0x190   : > { %v1158_v36 = vadd.f32 %v1126_v57, %v1058_v21  ;;  %v1597_v25 = vadd.f32 %v3005_v11, %v1558_v15  ;;  %v1427_v38 = vmul.f32 %v2416_v39, %v1391_v52  ;;  %v1428_v32 = vmul.f32 %v2416_v39, %v1392_v14  ;;  %v2192_v52 = vld [vmem:[%s2286_s8 + $0x38] sm:$0xff] }
 0x191   : > { %v1159_v51 = vadd.f32 %v1127_v17, %v1059_v34  ;;  %v1628_v58 = vmax.f32 %v1596_v42, 0.0  ;;  %v1527_v19 = vmul.f32 %v2422_v49, %v1491_v61  ;;  %v1528_v46 = vmul.f32 %v2422_v49, %v1492_v18  ;;  %v3208_v49 = vld [vmem:[%s3354_s6] ss:$0 sm:$0xff] }
 0x192   : > { %v1258_v16 = vadd.f32 %v1226_v56, %v1158_v36  ;;  %v1629_v28 = vmax.f32 %v1597_v25, 0.0  ;;  %v2193_v56 = vld [vmem:[%s2286_s8 + $0x28] sm:$0xff] }
 0x193   : > { %v1259_v43 = vadd.f32 %v1227_v27, %v1159_v51  ;;  %v1660_v59 = vmin.f32 %v1628_v58, 6.0  ;;  %v2194_v27 = vld [vmem:[%s2286_s8 + $0x50] sm:$0xff] }
 0x194   : > { %v1359_v29 = vadd.f32 %v1327_v37, %v1258_v16  ;;  %v1661_v62 = vmin.f32 %v1629_v28, 6.0  ;;  %v2195_v16 = vld [vmem:[%s2286_s8 + $0x40] sm:$0xff] }
 0x195   : > { %v1360_v44 = vadd.f32 %v1328_v47, %v1259_v43  ;;  %v2196_v43 = vld [vmem:[%s2286_s8 + $0x58] sm:$0xff] }
 0x196   : > { %v1459_v54 = vadd.f32 %v1427_v38, %v1359_v29  ;;  %v1678_v35 = vpack.c.bf16 %v1661_v62, %v1660_v59 }
 0x197   : > { %v1460_v31 = vadd.f32 %v1428_v32, %v1360_v44 }
 0x198   : > { %v1559_v24 = vadd.f32 %v1527_v19, %v1459_v54  ;;  %2170 = vmatprep.mubr.msk.bf16.mxu1 %vm614_vm2, %v1678_v35  ;;  %v2197_v19 = vld [vmem:[%s2286_s8 + $0x48] sm:$0xff]  ;;  %v2198_v54 = vld [vmem:[%s2286_s8 + $0x70] sm:$0xff] }
 0x199   : > { %v1560_v1 = vadd.f32 %v1528_v46, %v1460_v31 }
 0x19a   : > { %v1598_v50 = vadd.f32 %v3005_v11, %v1559_v24 }
 0x19b   : > { %v1599_v39 = vadd.f32 %v3005_v11, %v1560_v1  ;;  %v2199_v1 = vld [vmem:[%s2286_s8 + $0x60] sm:$0xff] }
 0x19c   : > { %v1630_v48 = vmax.f32 %v1598_v50, 0.0 }
 0x19d   : > { %v1631_v22 = vmax.f32 %v1599_v39, 0.0 }
 0x19e   : > { %v1662_v0 = vmin.f32 %v1630_v48, 6.0 }
 0x19f   : > { %v1663_v3 = vmin.f32 %v1631_v22, 6.0  ;;  %v2200_v22 = vld [vmem:[%s2286_s8 + $0x78] sm:$0xff] }
 0x1a1   : > { %v1679_v45 = vpack.c.bf16 %v1663_v3, %v1662_v0 }
 0x1a3   : > { %2171 = vmatmul.mubr.msk.bf16.gmra.mxu1 %vm614_vm2, %v1679_v45  ;;  %v2201_v45 = vld [vmem:[%s2286_s8 + $0x68] sm:$0xff] }
 0x1c6   : > { %v2144_v4 = vpop.f32.mrf.mxu1 }
 0x1c7   : > { %v1786_v10 = vadd.f32 %v2144_v4, %v3208_v49 }
 0x1c8   : > { %v1777_v11 = vpop.f32.mrf.mxu1 }
 0x1c9   : > { %v1906_v13 = vadd.f32 %v2186_v12, %v1786_v10  ;;  %v1778_v55 = vadd.f32 %v3208_v49, %v1777_v11 }
 0x1ca   : > { %v2145_v53 = vpop.f32.mrf.mxu1 }
 0x1cb   : > { %1938 = vst.msk [vmem:[%s3216_s30 + $0x10] sm:$0xff] %vm336_vm1, %v1906_v13  ;;  %v1904_v26 = vadd.f32 %v2187_v7, %v1778_v55  ;;  %v1789_v5 = vadd.f32 %v2145_v53, %v3208_v49  ;;  %v2202_v13 = vld [vmem:[%s2286_s8 + $0x90] sm:$0xff] }
 0x1cc   : > { %v1780_v60 = vpop.f32.mrf.mxu1 }
 0x1cd   : > { %1936 = vst.msk [vmem:[%s3216_s30] sm:$0xff] %vm336_vm1, %v1904_v26  ;;  %v1907_v40 = vadd.f32 %v2188_v2, %v1789_v5  ;;  %v1781_v30 = vadd.f32 %v3208_v49, %v1780_v60  ;;  %v2203_v26 = vld [vmem:[%s2286_s8 + $0x80] sm:$0xff] }
 0x1cf   : > { %1939 = vst.msk [vmem:[%s3216_s30 + $0x18] sm:$0xff] %vm336_vm1, %v1907_v40  ;;  %v1905_v23 = vadd.f32 %v2189_v20, %v1781_v30  ;;  %v2204_v40 = vld [vmem:[%s2286_s8 + $0x98] sm:$0xff] }
 0x1d1   : > { %1937 = vst.msk [vmem:[%s3216_s30 + $0x8] sm:$0xff] %vm336_vm1, %v1905_v23  ;;  %v2205_v23 = vld [vmem:[%s2286_s8 + $0x88] sm:$0xff] }
 0x1e5   : > { %v2148_v63 = vpop.f32.mrf.mxu1 }
 0x1e6   : > { %v1802_v6 = vadd.f32 %v2148_v63, %v3208_v49 }
 0x1e7   : > { %v1793_v9 = vpop.f32.mrf.mxu1 }
 0x1e8   : > { %v1910_v8 = vadd.f32 %v2190_v33, %v1802_v6  ;;  %v1794_v21 = vadd.f32 %v3208_v49, %v1793_v9 }
 0x1e9   : > { %v2149_v57 = vpop.f32.mrf.mxu1 }
 0x1ea   : > { %1942 = vst.msk [vmem:[%s3216_s30 + $0x30] sm:$0xff] %vm336_vm1, %v1910_v8  ;;  %v1908_v15 = vadd.f32 %v2191_v41, %v1794_v21  ;;  %v1805_v34 = vadd.f32 %v2149_v57, %v3208_v49  ;;  %v2206_v8 = vld [vmem:[%s2286_s8 + $0xb0] sm:$0xff] }
 0x1eb   : > { %v1796_v17 = vpop.f32.mrf.mxu1 }
 0x1ec   : > { %1940 = vst.msk [vmem:[%s3216_s30 + $0x20] sm:$0xff] %vm336_vm1, %v1908_v15  ;;  %v1911_v42 = vadd.f32 %v2192_v52, %v1805_v34  ;;  %v1797_v36 = vadd.f32 %v3208_v49, %v1796_v17  ;;  %v2207_v15 = vld [vmem:[%s2286_s8 + $0xa0] sm:$0xff] }
 0x1ee   : > { %1943 = vst.msk [vmem:[%s3216_s30 + $0x38] sm:$0xff] %vm336_vm1, %v1911_v42  ;;  %v1909_v37 = vadd.f32 %v2193_v56, %v1797_v36  ;;  %v2208_v42 = vld [vmem:[%s2286_s8 + $0xb8] sm:$0xff] }
 0x1f0   : > { %1941 = vst.msk [vmem:[%s3216_s30 + $0x28] sm:$0xff] %vm336_vm1, %v1909_v37  ;;  %v2209_v37 = vld [vmem:[%s2286_s8 + $0xa8] sm:$0xff] }
 0x1fd   : > { %v2152_v14 = vpop.f32.mrf.mxu1 }
 0x1fe   : > { %v1818_v25 = vadd.f32 %v2152_v14, %v3208_v49 }
 0x1ff   : > { %v1809_v51 = vpop.f32.mrf.mxu1 }
 0x200   : > { %v1914_v47 = vadd.f32 %v2194_v27, %v1818_v25  ;;  %v1810_v61 = vadd.f32 %v3208_v49, %v1809_v51 }
 0x201   : > { %v2153_v58 = vpop.f32.mrf.mxu1 }
 0x202   : > { %1946 = vst.msk [vmem:[%s3216_s30 + $0x50] sm:$0xff] %vm336_vm1, %v1914_v47  ;;  %v1912_v38 = vadd.f32 %v2195_v16, %v1810_v61  ;;  %v1821_v18 = vadd.f32 %v2153_v58, %v3208_v49  ;;  %v2210_v47 = vld [vmem:[%s2286_s8 + $0xd0] sm:$0xff] }
 0x203   : > { %v1812_v28 = vpop.f32.mrf.mxu1 }
 0x204   : > { %1944 = vst.msk [vmem:[%s3216_s30 + $0x40] sm:$0xff] %vm336_vm1, %v1912_v38  ;;  %v1915_v32 = vadd.f32 %v2196_v43, %v1821_v18  ;;  %v1813_v29 = vadd.f32 %v3208_v49, %v1812_v28  ;;  %v2211_v38 = vld [vmem:[%s2286_s8 + $0xc0] sm:$0xff] }
 0x206   : > { %1947 = vst.msk [vmem:[%s3216_s30 + $0x58] sm:$0xff] %vm336_vm1, %v1915_v32  ;;  %v1913_v59 = vadd.f32 %v2197_v19, %v1813_v29  ;;  %v2212_v32 = vld [vmem:[%s2286_s8 + $0xd8] sm:$0xff] }
 0x208   : > { %1945 = vst.msk [vmem:[%s3216_s30 + $0x48] sm:$0xff] %vm336_vm1, %v1913_v59  ;;  %v2213_v59 = vld [vmem:[%s2286_s8 + $0xc8] sm:$0xff] }
 0x210   : > { %v2156_v62 = vpop.f32.mrf.mxu1 }
 0x211   : > { %v1834_v44 = vadd.f32 %v2156_v62, %v3208_v49 }
 0x212   : > { %v1825_v46 = vpop.f32.mrf.mxu1 }
 0x213   : > { %v1918_v35 = vadd.f32 %v2198_v54, %v1834_v44  ;;  %v1826_v31 = vadd.f32 %v3208_v49, %v1825_v46 }
 0x214   : > { %v2157_v24 = vpop.f32.mrf.mxu1 }
 0x215   : > { %1950 = vst.msk [vmem:[%s3216_s30 + $0x70] sm:$0xff] %vm336_vm1, %v1918_v35  ;;  %v1916_v50 = vadd.f32 %v2199_v1, %v1826_v31  ;;  %v1837_v39 = vadd.f32 %v2157_v24, %v3208_v49  ;;  %v2214_v35 = vld [vmem:[%s2286_s8 + $0xf0] sm:$0xff] }
 0x216   : > { %v1828_v48 = vpop.f32.mrf.mxu1 }
 0x217   : > { %1948 = vst.msk [vmem:[%s3216_s30 + $0x60] sm:$0xff] %vm336_vm1, %v1916_v50  ;;  %v1919_v0 = vadd.f32 %v2200_v22, %v1837_v39  ;;  %v1829_v3 = vadd.f32 %v3208_v49, %v1828_v48  ;;  %v2215_v50 = vld [vmem:[%s2286_s8 + $0xe0] sm:$0xff] }
 0x219   : > { %1951 = vst.msk [vmem:[%s3216_s30 + $0x78] sm:$0xff] %vm336_vm1, %v1919_v0  ;;  %v1917_v4 = vadd.f32 %v2201_v45, %v1829_v3  ;;  %v2216_v0 = vld [vmem:[%s2286_s8 + $0xf8] sm:$0xff] }
 0x21b   : > { %1949 = vst.msk [vmem:[%s3216_s30 + $0x68] sm:$0xff] %vm336_vm1, %v1917_v4  ;;  %v2217_v4 = vld [vmem:[%s2286_s8 + $0xe8] sm:$0xff] }
 0x225   : > { %v2160_v10 = vpop.f32.mrf.mxu1 }
 0x226   : > { %v1850_v11 = vadd.f32 %v2160_v10, %v3208_v49 }
 0x227   : > { %v1841_v12 = vpop.f32.mrf.mxu1 }
 0x228   : > { %v1922_v55 = vadd.f32 %v2202_v13, %v1850_v11  ;;  %v1842_v53 = vadd.f32 %v3208_v49, %v1841_v12 }
 0x229   : > { %v2161_v7 = vpop.f32.mrf.mxu1 }
 0x22a   : > { %1954 = vst.msk [vmem:[%s3216_s30 + $0x90] sm:$0xff] %vm336_vm1, %v1922_v55  ;;  %v1920_v5 = vadd.f32 %v2203_v26, %v1842_v53  ;;  %v1853_v60 = vadd.f32 %v2161_v7, %v3208_v49 }
 0x22b   : > { %v1844_v2 = vpop.f32.mrf.mxu1 }
 0x22c   : > { %1952 = vst.msk [vmem:[%s3216_s30 + $0x80] sm:$0xff] %vm336_vm1, %v1920_v5  ;;  %v1923_v30 = vadd.f32 %v2204_v40, %v1853_v60  ;;  %v1845_v20 = vadd.f32 %v3208_v49, %v1844_v2 }
 0x22e   : > { %1955 = vst.msk [vmem:[%s3216_s30 + $0x98] sm:$0xff] %vm336_vm1, %v1923_v30  ;;  %v1921_v63 = vadd.f32 %v2205_v23, %v1845_v20 }
 0x230   : > { %1953 = vst.msk [vmem:[%s3216_s30 + $0x88] sm:$0xff] %vm336_vm1, %v1921_v63 }
 0x23a   : > { %v2164_v6 = vpop.f32.mrf.mxu1 }
 0x23b   : > { %v1866_v9 = vadd.f32 %v2164_v6, %v3208_v49 }
 0x23c   : > { %v1857_v33 = vpop.f32.mrf.mxu1 }
 0x23d   : > { %v1926_v21 = vadd.f32 %v2206_v8, %v1866_v9  ;;  %v1858_v57 = vadd.f32 %v3208_v49, %v1857_v33 }
 0x23e   : > { %v2165_v41 = vpop.f32.mrf.mxu1 }
 0x23f   : > { %1958 = vst.msk [vmem:[%s3216_s30 + $0xb0] sm:$0xff] %vm336_vm1, %v1926_v21  ;;  %v1924_v34 = vadd.f32 %v2207_v15, %v1858_v57  ;;  %v1869_v17 = vadd.f32 %v2165_v41, %v3208_v49 }
 0x240   : > { %v1860_v52 = vpop.f32.mrf.mxu1 }
 0x241   : > { %1956 = vst.msk [vmem:[%s3216_s30 + $0xa0] sm:$0xff] %vm336_vm1, %v1924_v34  ;;  %v1927_v36 = vadd.f32 %v2208_v42, %v1869_v17  ;;  %v1861_v56 = vadd.f32 %v3208_v49, %v1860_v52 }
 0x243   : > { %1959 = vst.msk [vmem:[%s3216_s30 + $0xb8] sm:$0xff] %vm336_vm1, %v1927_v36  ;;  %v1925_v14 = vadd.f32 %v2209_v37, %v1861_v56 }
 0x245   : > { %1957 = vst.msk [vmem:[%s3216_s30 + $0xa8] sm:$0xff] %vm336_vm1, %v1925_v14 }
 0x24e   : > { %v2168_v25 = vpop.f32.mrf.mxu1 }
 0x24f   : > { %v1882_v51 = vadd.f32 %v2168_v25, %v3208_v49 }
 0x250   : > { %v1873_v27 = vpop.f32.mrf.mxu1 }
 0x251   : > { %v1930_v61 = vadd.f32 %v2210_v47, %v1882_v51  ;;  %v1874_v58 = vadd.f32 %v3208_v49, %v1873_v27 }
 0x252   : > { %v2169_v16 = vpop.f32.mrf.mxu1 }
 0x253   : > { %1962 = vst.msk [vmem:[%s3216_s30 + $0xd0] sm:$0xff] %vm336_vm1, %v1930_v61  ;;  %v1928_v18 = vadd.f32 %v2211_v38, %v1874_v58  ;;  %v1885_v28 = vadd.f32 %v2169_v16, %v3208_v49 }
 0x254   : > { %v1876_v43 = vpop.f32.mrf.mxu1 }
 0x255   : > { %1960 = vst.msk [vmem:[%s3216_s30 + $0xc0] sm:$0xff] %vm336_vm1, %v1928_v18  ;;  %v1931_v29 = vadd.f32 %v2212_v32, %v1885_v28  ;;  %v1877_v19 = vadd.f32 %v3208_v49, %v1876_v43 }
 0x257   : > { %1963 = vst.msk [vmem:[%s3216_s30 + $0xd8] sm:$0xff] %vm336_vm1, %v1931_v29  ;;  %v1929_v62 = vadd.f32 %v2213_v59, %v1877_v19 }
 0x259   : > { %1961 = vst.msk [vmem:[%s3216_s30 + $0xc8] sm:$0xff] %vm336_vm1, %v1929_v62 }
 0x263   : > { %v2172_v44 = vpop.f32.mrf.mxu1 }
 0x264   : > { %v1898_v46 = vadd.f32 %v2172_v44, %v3208_v49 }
 0x265   : > { %v1889_v54 = vpop.f32.mrf.mxu1 }
 0x266   : > { %v1934_v31 = vadd.f32 %v2214_v35, %v1898_v46  ;;  %v1890_v24 = vadd.f32 %v3208_v49, %v1889_v54 }
 0x267   : > { %v2173_v1 = vpop.f32.mrf.mxu1 }
 0x268   : > { %1966 = vst.msk [vmem:[%s3216_s30 + $0xf0] sm:$0xff] %vm336_vm1, %v1934_v31  ;;  %v1932_v39 = vadd.f32 %v2215_v50, %v1890_v24  ;;  %v1901_v48 = vadd.f32 %v2173_v1, %v3208_v49 }
 0x269   : > { %v1892_v22 = vpop.f32.mrf.mxu1 }
 0x26a   : > { %1964 = vst.msk [vmem:[%s3216_s30 + $0xe0] sm:$0xff] %vm336_vm1, %v1932_v39  ;;  %v1935_v3 = vadd.f32 %v2216_v0, %v1901_v48  ;;  %v1893_v45 = vadd.f32 %v3208_v49, %v1892_v22 }
 0x26c   : > { %1967 = vst.msk [vmem:[%s3216_s30 + $0xf8] sm:$0xff] %vm336_vm1, %v1935_v3  ;;  %v1933_v10 = vadd.f32 %v2217_v4, %v1893_v45 }
 0x26e   : > { %1965 = vst.msk [vmem:[%s3216_s30 + $0xe8] sm:$0xff] %vm336_vm1, %v1933_v10 }
 0x26f PF: > { %s17_s24 = sadd.s32 1, %s2224_s24  }
 0x270   : > { %p14_p4 = scmp.ge.s32.totalorder %s17_s24, 4  }
 0x272   :  { %16 = sbr.rel (!%p14_p4) target bundleno = 1 (0x1), region = 81 }

</bundles_post_ra>
